<compile_context>
chip_gen: v7x
topology: tpu7x:2x2x1
jax: 0.10.0
libtpu: 0.0.40
codegen_flags: <defaults>
</compile_context>

<pallas_src>
import jax
import jax.numpy as jnp
from jax import lax
from jax.experimental import pallas as pl
from jax.experimental.pallas import tpu as pltpu

KS = 3
PAD = 1
EPS = 1e-5
LANE = 128


def _round_up(x, m):
    return (x + m - 1) // m * m


def _pick_tile_rows(h, w, max_rows=1024):
    """Largest divisor of H giving <= max_rows output pixels per tile; prefer
    >= 2 row-tiles so the pipeline (and the halo path) is actually exercised."""
    cands = [d for d in range(1, h + 1)
             if h % d == 0 and d * w <= max_rows and (d < h or h == 1)]
    return max(cands) if cands else 1


def _conv_stats_kernel(xm_ref, xh0_ref, xh1_ref, w_ref, y_ref, st_ref, win_ref):
    """Per-tile 3x3 conv + per-tile partial BatchNorm statistics.

    xm_ref : (1, TH, Wp, Cin)    main TH padded-input rows of this tile
    xh0_ref: (1, 1,  Wp, Cin)    halo row TH   (first row below the main block)
    xh1_ref: (1, 1,  Wp, Cin)    halo row TH+1
    w_ref  : (3, 3, Cin, Cpad)   weights, zero-padded along Cout -> Cpad
    y_ref  : (1, TH, W, Cpad)    f32 conv output tile (lane-dense)
    st_ref : (1, 1, 8, Cpad)     row 0 = sum, row 1 = sum of squares
    win_ref: (TH+2, Wp, Cin)     VMEM scratch: haloed input window
    """
    _, th, wp, cin = xm_ref.shape
    w_out = y_ref.shape[2]
    cpad = y_ref.shape[3]

    # Assemble the haloed window in VMEM scratch (row-axis stores only).
    win_ref[0:th] = xm_ref[0]
    win_ref[th:th + 1] = xh0_ref[0]
    win_ref[th + 1:th + 2] = xh1_ref[0]

    if cin % LANE == 0:
        # Lane-aligned channels: fold all 9 taps into a single im2col matmul
        # (K = 9*Cin) so the MXU sees one deep contraction per tile.
        taps = [win_ref[kh:kh + th, kw:kw + w_out, :]
                for kh in range(KS) for kw in range(KS)]
        patch = jnp.concatenate(taps, axis=-1).reshape(th * w_out, KS * KS * cin)
        wmat = w_ref[...].reshape(KS * KS * cin, cpad)
        acc = jnp.dot(patch, wmat, preferred_element_type=jnp.float32)
    else:
        # TODO(synk): for Cin not a multiple of 128 the full im2col fold needs an
        # unaligned lane-axis concat; fall back to 9 accumulated K=Cin MXU dots.
        acc = jnp.zeros((th * w_out, cpad), jnp.float32)
        for kh in range(KS):
            for kw in range(KS):
                tap = win_ref[kh:kh + th, kw:kw + w_out, :].reshape(
                    th * w_out, cin)
                acc = acc + jnp.dot(tap, w_ref[kh, kw],
                                    preferred_element_type=jnp.float32)

    # Conv activation tile (f32) -> HBM; this VMEM block is the accumulator.
    y_ref[...] = acc.reshape(1, th, w_out, cpad)

    # Per-tile partial BatchNorm statistics (single pass: sum & sum of squares;
    # the global reduction is finished outside the kernel).
    st_ref[...] = jnp.zeros_like(st_ref)
    st_ref[0, 0, 0:1, :] = jnp.sum(acc, axis=0, keepdims=True)
    st_ref[0, 0, 1:2, :] = jnp.sum(acc * acc, axis=0, keepdims=True)


def _bn_relu_kernel(y_ref, scale_ref, shift_ref, o_ref):
    """Fused BN epilogue + ReLU: out = max(y * scale + shift, 0)."""
    cpad = y_ref.shape[-1]
    scale = scale_ref[...].reshape(1, 1, 1, cpad)
    shift = shift_ref[...].reshape(1, 1, 1, cpad)
    o_ref[...] = jnp.maximum(y_ref[...] * scale + shift, 0.0).astype(o_ref.dtype)


@jax.jit
def conv_bn_relu(x_nchw, weight_oihw, gamma, beta):
    """x: (N, Cin, H, W); weight: (Cout, Cin, 3, 3); gamma/beta: (Cout,)."""
    n, cin, h, w = x_nchw.shape
    cout = weight_oihw.shape[0]
    cpad = _round_up(cout, LANE)
    th = _pick_tile_rows(h, w)
    n_h = h // th
    hp, wp = h + 2 * PAD, w + 2 * PAD

    out_dtype = x_nchw.dtype
    compute_dtype = jnp.bfloat16 if x_nchw.dtype == jnp.bfloat16 else jnp.float32

    # NCHW -> NHWC (+ 1px zero pad): channels land on the lane axis.
    # TODO(synk): accepting NHWC natively would remove these wrapper HBM passes.
    x_nhwc = jnp.transpose(x_nchw, (0, 2, 3, 1)).astype(compute_dtype)
    x_pad = jnp.pad(x_nhwc, ((0, 0), (PAD, PAD), (PAD, PAD), (0, 0)))

    # OIHW -> (kh, kw, Cin, Cpad) with Cout zero-padded to a lane multiple.
    w_k = jnp.transpose(weight_oihw, (2, 3, 1, 0)).astype(compute_dtype)
    w_k = jnp.pad(w_k, ((0, 0), (0, 0), (0, 0), (0, cpad - cout)))

    grid = (n, n_h)
    params = pltpu.CompilerParams(dimension_semantics=("parallel", "parallel"))

    # ---- pass 1: tiled conv + per-tile partial BN statistics -----------------
    y_conv, stats = pl.pallas_call(
        _conv_stats_kernel,
        grid=grid,
        in_specs=[
            pl.BlockSpec((1, th, wp, cin), lambda b, i: (b, i, 0, 0)),
            pl.BlockSpec((1, 1, wp, cin), lambda b, i: (b, i * th + th, 0, 0)),
            pl.BlockSpec((1, 1, wp, cin), lambda b, i: (b, i * th + th + 1, 0, 0)),
            pl.BlockSpec((KS, KS, cin, cpad), lambda b, i: (0, 0, 0, 0)),
        ],
        out_specs=[
            pl.BlockSpec((1, th, w, cpad), lambda b, i: (b, i, 0, 0)),
            pl.BlockSpec((1, 1, 8, cpad), lambda b, i: (b, i, 0, 0)),
        ],
        out_shape=[
            jax.ShapeDtypeStruct((n, h, w, cpad), jnp.float32),
            jax.ShapeDtypeStruct((n, n_h, 8, cpad), jnp.float32),
        ],
        scratch_shapes=[pltpu.VMEM((th + 2, wp, cin), compute_dtype)],
        compiler_params=params,
    )(x_pad, x_pad, x_pad, w_k)

    # ---- glue: finish the global BN reduction (tiny) and fuse scale/shift ----
    count = float(n * h * w)
    ch_sum = jnp.sum(stats[:, :, 0, :], axis=(0, 1))
    ch_ssq = jnp.sum(stats[:, :, 1, :], axis=(0, 1))
    mean = ch_sum / count
    var = jnp.maximum(ch_ssq / count - mean * mean, 0.0)
    gamma_p = jnp.pad(gamma.astype(jnp.float32), (0, cpad - cout))
    beta_p = jnp.pad(beta.astype(jnp.float32), (0, cpad - cout))
    scale = gamma_p * lax.rsqrt(var + EPS)
    shift = beta_p - mean * scale

    # ---- pass 2: tiled normalize + ReLU --------------------------------------
    out_pad = pl.pallas_call(
        _bn_relu_kernel,
        grid=grid,
        in_specs=[
            pl.BlockSpec((1, th, w, cpad), lambda b, i: (b, i, 0, 0)),
            pl.BlockSpec((1, cpad), lambda b, i: (0, 0)),
            pl.BlockSpec((1, cpad), lambda b, i: (0, 0)),
        ],
        out_specs=pl.BlockSpec((1, th, w, cpad), lambda b, i: (b, i, 0, 0)),
        out_shape=jax.ShapeDtypeStruct((n, h, w, cpad), out_dtype),
        compiler_params=params,
    )(y_conv, scale.reshape(1, cpad), shift.reshape(1, cpad))

    # Drop the channel padding and return NCHW (PyTorch convention).
    return jnp.transpose(out_pad[:, :, :, :cout], (0, 3, 1, 2))


def reference(x_nchw, weight_oihw, gamma, beta):
    # Pure-JAX reference for correctness checking (conv + training-mode BN + ReLU).
    y = lax.conv_general_dilated(
        x_nchw.astype(jnp.float32),
        weight_oihw.astype(jnp.float32),
        window_strides=(1, 1),
        padding=((PAD, PAD), (PAD, PAD)),
        dimension_numbers=("NCHW", "OIHW", "NCHW"),
    )
    mean = jnp.mean(y, axis=(0, 2, 3), keepdims=True)
    var = jnp.mean((y - mean) ** 2, axis=(0, 2, 3), keepdims=True)
    yhat = (y - mean) * lax.rsqrt(var + EPS)
    yhat = yhat * gamma.reshape(1, -1, 1, 1) + beta.reshape(1, -1, 1, 1)
    return jnp.maximum(yhat, 0.0)


if __name__ == "__main__":
    key = jax.random.PRNGKey(0)
    k_x, k_w = jax.random.split(key)

    N, Cin, H, W = 2, 4, 16, 16
    Cout = 8

    x = jax.random.normal(k_x, (N, Cin, H, W), dtype=jnp.float32)
    weight = jax.random.normal(k_w, (Cout, Cin, KS, KS), dtype=jnp.float32) * 0.1
    gamma = 1.0 + 0.1 * jnp.arange(Cout, dtype=jnp.float32)
    beta = 0.05 * jnp.arange(Cout, dtype=jnp.float32)

    out = conv_bn_relu(x, weight, gamma, beta)
    out = jax.block_until_ready(out)

    ref = reference(x, weight, gamma, beta)
    assert out.shape == (N, Cout, H, W)
    err = float(jnp.max(jnp.abs(out - ref)))
    assert err < 2e-4, f"max abs err {err}"

    print("KERNEL_OK")
</pallas_src>

<mosaic_0001>
module attributes {stable_mosaic.version = 11 : i64} {
  func.func @_conv_stats_kernel(%arg0: i32, %arg1: i32, %arg2: memref<1x8x18x4xf32, #tpu.memory_space<vmem>>, %arg3: memref<1x1x18x4xf32, #tpu.memory_space<vmem>>, %arg4: memref<1x1x18x4xf32, #tpu.memory_space<vmem>>, %arg5: memref<3x3x4x128xf32, #tpu.memory_space<vmem>>, %arg6: memref<1x8x16x128xf32, #tpu.memory_space<vmem>>, %arg7: memref<1x1x8x128xf32, #tpu.memory_space<vmem>>, %arg8: memref<10x18x4xf32, #tpu.memory_space<vmem>>) attributes {dimension_semantics = [#tpu.dimension_semantics<parallel>, #tpu.dimension_semantics<parallel>], iteration_bounds = array<i64: 2, 2>, scalar_prefetch = 0 : i64, scratch_operands = 1 : i64, tpu.core_type = #tpu.core_type<tc>, window_params = [{transform_indices = @transform_0, window_bounds = array<i64: 1, 8, 18, 4>}, {transform_indices = @transform_1, window_bounds = array<i64: 1, 1, 18, 4>}, {transform_indices = @transform_2, window_bounds = array<i64: 1, 1, 18, 4>}, {pipeline_mode = #tpu.pipeline_mode<synchronous>, transform_indices = @transform_3, window_bounds = array<i64: 3, 3, 4, 128>}, {transform_indices = @transform_4, window_bounds = array<i64: 1, 8, 16, 128>}, {transform_indices = @transform_5, window_bounds = array<i64: 1, 1, 8, 128>}]} {
    %c0 = arith.constant 0 : index
    %c0_0 = arith.constant 0 : index
    %c0_1 = arith.constant 0 : index
    %c0_2 = arith.constant 0 : index
    %0 = vector.load %arg2[%c0, %c0_0, %c0_1, %c0_2] : memref<1x8x18x4xf32, #tpu.memory_space<vmem>>, vector<1x8x18x4xf32>
    %1 = vector.shape_cast %0 : vector<1x8x18x4xf32> to vector<8x18x4xf32>
    %c0_3 = arith.constant 0 : index
    %c0_4 = arith.constant 0 : index
    %c0_5 = arith.constant 0 : index
    %2 = vector.load %arg8[%c0_3, %c0_4, %c0_5] : memref<10x18x4xf32, #tpu.memory_space<vmem>>, vector<8x18x4xf32>
    tpu.vector_store %arg8[%c0_3, %c0_4, %c0_5], %1 {strides = array<i32>} : memref<10x18x4xf32, #tpu.memory_space<vmem>>, vector<8x18x4xf32>,
    %c0_6 = arith.constant 0 : index
    %c0_7 = arith.constant 0 : index
    %c0_8 = arith.constant 0 : index
    %c0_9 = arith.constant 0 : index
    %3 = vector.load %arg3[%c0_6, %c0_7, %c0_8, %c0_9] : memref<1x1x18x4xf32, #tpu.memory_space<vmem>>, vector<1x1x18x4xf32>
    %4 = vector.shape_cast %3 : vector<1x1x18x4xf32> to vector<1x18x4xf32>
    %c8 = arith.constant 8 : index
    %c0_10 = arith.constant 0 : index
    %c0_11 = arith.constant 0 : index
    %5 = vector.load %arg8[%c8, %c0_10, %c0_11] : memref<10x18x4xf32, #tpu.memory_space<vmem>>, vector<1x18x4xf32>
    tpu.vector_store %arg8[%c8, %c0_10, %c0_11], %4 {strides = array<i32>} : memref<10x18x4xf32, #tpu.memory_space<vmem>>, vector<1x18x4xf32>,
    %c0_12 = arith.constant 0 : index
    %c0_13 = arith.constant 0 : index
    %c0_14 = arith.constant 0 : index
    %c0_15 = arith.constant 0 : index
    %6 = vector.load %arg4[%c0_12, %c0_13, %c0_14, %c0_15] : memref<1x1x18x4xf32, #tpu.memory_space<vmem>>, vector<1x1x18x4xf32>
    %7 = vector.shape_cast %6 : vector<1x1x18x4xf32> to vector<1x18x4xf32>
    %c9 = arith.constant 9 : index
    %c0_16 = arith.constant 0 : index
    %c0_17 = arith.constant 0 : index
    %8 = vector.load %arg8[%c9, %c0_16, %c0_17] : memref<10x18x4xf32, #tpu.memory_space<vmem>>, vector<1x18x4xf32>
    tpu.vector_store %arg8[%c9, %c0_16, %c0_17], %7 {strides = array<i32>} : memref<10x18x4xf32, #tpu.memory_space<vmem>>, vector<1x18x4xf32>,
    %cst = arith.constant 0.000000e+00 : f32
    %9 = vector.broadcast %cst : f32 to vector<128x128xf32>
    %c0_18 = arith.constant 0 : index
    %c0_19 = arith.constant 0 : index
    %c0_20 = arith.constant 0 : index
    %10 = vector.load %arg8[%c0_18, %c0_19, %c0_20] : memref<10x18x4xf32, #tpu.memory_space<vmem>>, vector<8x16x4xf32>
    %11 = vector.shape_cast %10 : vector<8x16x4xf32> to vector<128x4xf32>
    %c0_21 = arith.constant 0 : index
    %c0_22 = arith.constant 0 : index
    %c0_23 = arith.constant 0 : index
    %c0_24 = arith.constant 0 : index
    %12 = vector.load %arg5[%c0_21, %c0_22, %c0_23, %c0_24] : memref<3x3x4x128xf32, #tpu.memory_space<vmem>>, vector<1x1x4x128xf32>
    %13 = vector.shape_cast %12 : vector<1x1x4x128xf32> to vector<4x128xf32>
    %cst_25 = arith.constant dense<0.000000e+00> : vector<128x128xf32>
    %14 = tpu.matmul %11, %13, %cst_25 {dimension_numbers = #tpu.dot_dimension_numbers<[1], [0], [0], [1], [0, 0, 1, 1], [], []>} : vector<128x4xf32>, vector<4x128xf32>, vector<128x128xf32> -> vector<128x128xf32>
    %15 = arith.addf %9, %14 : vector<128x128xf32>
    %c0_26 = arith.constant 0 : index
    %c1 = arith.constant 1 : index
    %c0_27 = arith.constant 0 : index
    %16 = vector.load %arg8[%c0_26, %c1, %c0_27] : memref<10x18x4xf32, #tpu.memory_space<vmem>>, vector<8x16x4xf32>
    %17 = vector.shape_cast %16 : vector<8x16x4xf32> to vector<128x4xf32>
    %c0_28 = arith.constant 0 : index
    %c1_29 = arith.constant 1 : index
    %c0_30 = arith.constant 0 : index
    %c0_31 = arith.constant 0 : index
    %18 = vector.load %arg5[%c0_28, %c1_29, %c0_30, %c0_31] : memref<3x3x4x128xf32, #tpu.memory_space<vmem>>, vector<1x1x4x128xf32>
    %19 = vector.shape_cast %18 : vector<1x1x4x128xf32> to vector<4x128xf32>
    %cst_32 = arith.constant dense<0.000000e+00> : vector<128x128xf32>
    %20 = tpu.matmul %17, %19, %cst_32 {dimension_numbers = #tpu.dot_dimension_numbers<[1], [0], [0], [1], [0, 0, 1, 1], [], []>} : vector<128x4xf32>, vector<4x128xf32>, vector<128x128xf32> -> vector<128x128xf32>
    %21 = arith.addf %15, %20 : vector<128x128xf32>
    %c0_33 = arith.constant 0 : index
    %c2 = arith.constant 2 : index
    %c0_34 = arith.constant 0 : index
    %22 = vector.load %arg8[%c0_33, %c2, %c0_34] : memref<10x18x4xf32, #tpu.memory_space<vmem>>, vector<8x16x4xf32>
    %23 = vector.shape_cast %22 : vector<8x16x4xf32> to vector<128x4xf32>
    %c0_35 = arith.constant 0 : index
    %c2_36 = arith.constant 2 : index
    %c0_37 = arith.constant 0 : index
    %c0_38 = arith.constant 0 : index
    %24 = vector.load %arg5[%c0_35, %c2_36, %c0_37, %c0_38] : memref<3x3x4x128xf32, #tpu.memory_space<vmem>>, vector<1x1x4x128xf32>
    %25 = vector.shape_cast %24 : vector<1x1x4x128xf32> to vector<4x128xf32>
    %cst_39 = arith.constant dense<0.000000e+00> : vector<128x128xf32>
    %26 = tpu.matmul %23, %25, %cst_39 {dimension_numbers = #tpu.dot_dimension_numbers<[1], [0], [0], [1], [0, 0, 1, 1], [], []>} : vector<128x4xf32>, vector<4x128xf32>, vector<128x128xf32> -> vector<128x128xf32>
    %27 = arith.addf %21, %26 : vector<128x128xf32>
    %c1_40 = arith.constant 1 : index
    %c0_41 = arith.constant 0 : index
    %c0_42 = arith.constant 0 : index
    %28 = vector.load %arg8[%c1_40, %c0_41, %c0_42] : memref<10x18x4xf32, #tpu.memory_space<vmem>>, vector<8x16x4xf32>
    %29 = vector.shape_cast %28 : vector<8x16x4xf32> to vector<128x4xf32>
    %c1_43 = arith.constant 1 : index
    %c0_44 = arith.constant 0 : index
    %c0_45 = arith.constant 0 : index
    %c0_46 = arith.constant 0 : index
    %30 = vector.load %arg5[%c1_43, %c0_44, %c0_45, %c0_46] : memref<3x3x4x128xf32, #tpu.memory_space<vmem>>, vector<1x1x4x128xf32>
    %31 = vector.shape_cast %30 : vector<1x1x4x128xf32> to vector<4x128xf32>
    %cst_47 = arith.constant dense<0.000000e+00> : vector<128x128xf32>
    %32 = tpu.matmul %29, %31, %cst_47 {dimension_numbers = #tpu.dot_dimension_numbers<[1], [0], [0], [1], [0, 0, 1, 1], [], []>} : vector<128x4xf32>, vector<4x128xf32>, vector<128x128xf32> -> vector<128x128xf32>
    %33 = arith.addf %27, %32 : vector<128x128xf32>
    %c1_48 = arith.constant 1 : index
    %c1_49 = arith.constant 1 : index
    %c0_50 = arith.constant 0 : index
    %34 = vector.load %arg8[%c1_48, %c1_49, %c0_50] : memref<10x18x4xf32, #tpu.memory_space<vmem>>, vector<8x16x4xf32>
    %35 = vector.shape_cast %34 : vector<8x16x4xf32> to vector<128x4xf32>
    %c1_51 = arith.constant 1 : index
    %c1_52 = arith.constant 1 : index
    %c0_53 = arith.constant 0 : index
    %c0_54 = arith.constant 0 : index
    %36 = vector.load %arg5[%c1_51, %c1_52, %c0_53, %c0_54] : memref<3x3x4x128xf32, #tpu.memory_space<vmem>>, vector<1x1x4x128xf32>
    %37 = vector.shape_cast %36 : vector<1x1x4x128xf32> to vector<4x128xf32>
    %cst_55 = arith.constant dense<0.000000e+00> : vector<128x128xf32>
    %38 = tpu.matmul %35, %37, %cst_55 {dimension_numbers = #tpu.dot_dimension_numbers<[1], [0], [0], [1], [0, 0, 1, 1], [], []>} : vector<128x4xf32>, vector<4x128xf32>, vector<128x128xf32> -> vector<128x128xf32>
    %39 = arith.addf %33, %38 : vector<128x128xf32>
    %c1_56 = arith.constant 1 : index
    %c2_57 = arith.constant 2 : index
    %c0_58 = arith.constant 0 : index
    %40 = vector.load %arg8[%c1_56, %c2_57, %c0_58] : memref<10x18x4xf32, #tpu.memory_space<vmem>>, vector<8x16x4xf32>
    %41 = vector.shape_cast %40 : vector<8x16x4xf32> to vector<128x4xf32>
    %c1_59 = arith.constant 1 : index
    %c2_60 = arith.constant 2 : index
    %c0_61 = arith.constant 0 : index
    %c0_62 = arith.constant 0 : index
    %42 = vector.load %arg5[%c1_59, %c2_60, %c0_61, %c0_62] : memref<3x3x4x128xf32, #tpu.memory_space<vmem>>, vector<1x1x4x128xf32>
    %43 = vector.shape_cast %42 : vector<1x1x4x128xf32> to vector<4x128xf32>
    %cst_63 = arith.constant dense<0.000000e+00> : vector<128x128xf32>
    %44 = tpu.matmul %41, %43, %cst_63 {dimension_numbers = #tpu.dot_dimension_numbers<[1], [0], [0], [1], [0, 0, 1, 1], [], []>} : vector<128x4xf32>, vector<4x128xf32>, vector<128x128xf32> -> vector<128x128xf32>
    %45 = arith.addf %39, %44 : vector<128x128xf32>
    %c2_64 = arith.constant 2 : index
    %c0_65 = arith.constant 0 : index
    %c0_66 = arith.constant 0 : index
    %46 = vector.load %arg8[%c2_64, %c0_65, %c0_66] : memref<10x18x4xf32, #tpu.memory_space<vmem>>, vector<8x16x4xf32>
    %47 = vector.shape_cast %46 : vector<8x16x4xf32> to vector<128x4xf32>
    %c2_67 = arith.constant 2 : index
    %c0_68 = arith.constant 0 : index
    %c0_69 = arith.constant 0 : index
    %c0_70 = arith.constant 0 : index
    %48 = vector.load %arg5[%c2_67, %c0_68, %c0_69, %c0_70] : memref<3x3x4x128xf32, #tpu.memory_space<vmem>>, vector<1x1x4x128xf32>
    %49 = vector.shape_cast %48 : vector<1x1x4x128xf32> to vector<4x128xf32>
    %cst_71 = arith.constant dense<0.000000e+00> : vector<128x128xf32>
    %50 = tpu.matmul %47, %49, %cst_71 {dimension_numbers = #tpu.dot_dimension_numbers<[1], [0], [0], [1], [0, 0, 1, 1], [], []>} : vector<128x4xf32>, vector<4x128xf32>, vector<128x128xf32> -> vector<128x128xf32>
    %51 = arith.addf %45, %50 : vector<128x128xf32>
    %c2_72 = arith.constant 2 : index
    %c1_73 = arith.constant 1 : index
    %c0_74 = arith.constant 0 : index
    %52 = vector.load %arg8[%c2_72, %c1_73, %c0_74] : memref<10x18x4xf32, #tpu.memory_space<vmem>>, vector<8x16x4xf32>
    %53 = vector.shape_cast %52 : vector<8x16x4xf32> to vector<128x4xf32>
    %c2_75 = arith.constant 2 : index
    %c1_76 = arith.constant 1 : index
    %c0_77 = arith.constant 0 : index
    %c0_78 = arith.constant 0 : index
    %54 = vector.load %arg5[%c2_75, %c1_76, %c0_77, %c0_78] : memref<3x3x4x128xf32, #tpu.memory_space<vmem>>, vector<1x1x4x128xf32>
    %55 = vector.shape_cast %54 : vector<1x1x4x128xf32> to vector<4x128xf32>
    %cst_79 = arith.constant dense<0.000000e+00> : vector<128x128xf32>
    %56 = tpu.matmul %53, %55, %cst_79 {dimension_numbers = #tpu.dot_dimension_numbers<[1], [0], [0], [1], [0, 0, 1, 1], [], []>} : vector<128x4xf32>, vector<4x128xf32>, vector<128x128xf32> -> vector<128x128xf32>
    %57 = arith.addf %51, %56 : vector<128x128xf32>
    %c2_80 = arith.constant 2 : index
    %c2_81 = arith.constant 2 : index
    %c0_82 = arith.constant 0 : index
    %58 = vector.load %arg8[%c2_80, %c2_81, %c0_82] : memref<10x18x4xf32, #tpu.memory_space<vmem>>, vector<8x16x4xf32>
    %59 = vector.shape_cast %58 : vector<8x16x4xf32> to vector<128x4xf32>
    %c2_83 = arith.constant 2 : index
    %c2_84 = arith.constant 2 : index
    %c0_85 = arith.constant 0 : index
    %c0_86 = arith.constant 0 : index
    %60 = vector.load %arg5[%c2_83, %c2_84, %c0_85, %c0_86] : memref<3x3x4x128xf32, #tpu.memory_space<vmem>>, vector<1x1x4x128xf32>
    %61 = vector.shape_cast %60 : vector<1x1x4x128xf32> to vector<4x128xf32>
    %cst_87 = arith.constant dense<0.000000e+00> : vector<128x128xf32>
    %62 = tpu.matmul %59, %61, %cst_87 {dimension_numbers = #tpu.dot_dimension_numbers<[1], [0], [0], [1], [0, 0, 1, 1], [], []>} : vector<128x4xf32>, vector<4x128xf32>, vector<128x128xf32> -> vector<128x128xf32>
    %63 = arith.addf %57, %62 : vector<128x128xf32>
    %64 = vector.shape_cast %63 : vector<128x128xf32> to vector<1x8x16x128xf32>
    %c0_88 = arith.constant 0 : index
    %c0_89 = arith.constant 0 : index
    %c0_90 = arith.constant 0 : index
    %c0_91 = arith.constant 0 : index
    %65 = vector.load %arg6[%c0_88, %c0_89, %c0_90, %c0_91] : memref<1x8x16x128xf32, #tpu.memory_space<vmem>>, vector<1x8x16x128xf32>
    tpu.vector_store %arg6[%c0_88, %c0_89, %c0_90, %c0_91], %64 {strides = array<i32>} : memref<1x8x16x128xf32, #tpu.memory_space<vmem>>, vector<1x8x16x128xf32>,
    %cst_92 = arith.constant 0.000000e+00 : f32
    %66 = vector.broadcast %cst_92 : f32 to vector<1x1x8x128xf32>
    %c0_93 = arith.constant 0 : index
    %c0_94 = arith.constant 0 : index
    %c0_95 = arith.constant 0 : index
    %c0_96 = arith.constant 0 : index
    %67 = vector.load %arg7[%c0_93, %c0_94, %c0_95, %c0_96] : memref<1x1x8x128xf32, #tpu.memory_space<vmem>>, vector<1x1x8x128xf32>
    tpu.vector_store %arg7[%c0_93, %c0_94, %c0_95, %c0_96], %66 {strides = array<i32>} : memref<1x1x8x128xf32, #tpu.memory_space<vmem>>, vector<1x1x8x128xf32>,
    %cst_97 = arith.constant dense<0.000000e+00> : vector<128xf32>
    %68 = vector.multi_reduction <add>, %63, %cst_97 [0] : vector<128x128xf32> to vector<128xf32>
    %69 = vector.shape_cast %68 : vector<128xf32> to vector<1x128xf32>
    %c0_98 = arith.constant 0 : index
    %c0_99 = arith.constant 0 : index
    %c0_100 = arith.constant 0 : index
    %c0_101 = arith.constant 0 : index
    %70 = vector.load %arg7[%c0_98, %c0_99, %c0_100, %c0_101] : memref<1x1x8x128xf32, #tpu.memory_space<vmem>>, vector<1x1x1x128xf32>
    %71 = vector.shape_cast %70 : vector<1x1x1x128xf32> to vector<1x128xf32>
    %72 = vector.shape_cast %69 : vector<1x128xf32> to vector<1x1x1x128xf32>
    tpu.vector_store %arg7[%c0_98, %c0_99, %c0_100, %c0_101], %72 {strides = array<i32>} : memref<1x1x8x128xf32, #tpu.memory_space<vmem>>, vector<1x1x1x128xf32>,
    %73 = arith.mulf %63, %63 : vector<128x128xf32>
    %cst_102 = arith.constant dense<0.000000e+00> : vector<128xf32>
    %74 = vector.multi_reduction <add>, %73, %cst_102 [0] : vector<128x128xf32> to vector<128xf32>
    %75 = vector.shape_cast %74 : vector<128xf32> to vector<1x128xf32>
    %c0_103 = arith.constant 0 : index
    %c0_104 = arith.constant 0 : index
    %c1_105 = arith.constant 1 : index
    %c0_106 = arith.constant 0 : index
    %76 = vector.load %arg7[%c0_103, %c0_104, %c1_105, %c0_106] : memref<1x1x8x128xf32, #tpu.memory_space<vmem>>, vector<1x1x1x128xf32>
    %77 = vector.shape_cast %76 : vector<1x1x1x128xf32> to vector<1x128xf32>
    %78 = vector.shape_cast %75 : vector<1x128xf32> to vector<1x1x1x128xf32>
    tpu.vector_store %arg7[%c0_103, %c0_104, %c1_105, %c0_106], %78 {strides = array<i32>} : memref<1x1x8x128xf32, #tpu.memory_space<vmem>>, vector<1x1x1x128xf32>,
    return
  }
  func.func @transform_0(%arg0: i32, %arg1: i32) -> (i32, i32, i32, i32) {
    %c0_i32 = arith.constant 0 : i32
    %c0_i32_0 = arith.constant 0 : i32
    %c0_i32_1 = arith.constant 0 : i32
    return %arg0, %arg1, %c0_i32, %c0_i32_0 : i32, i32, i32, i32
  }
  func.func @transform_1(%arg0: i32, %arg1: i32) -> (i32, i32, i32, i32) {
    %c8_i32 = arith.constant 8 : i32
    %0 = arith.muli %arg1, %c8_i32 : i32
    %c8_i32_0 = arith.constant 8 : i32
    %1 = arith.addi %0, %c8_i32_0 : i32
    %c0_i32 = arith.constant 0 : i32
    %c0_i32_1 = arith.constant 0 : i32
    %c0_i32_2 = arith.constant 0 : i32
    return %arg0, %1, %c0_i32, %c0_i32_1 : i32, i32, i32, i32
  }
  func.func @transform_2(%arg0: i32, %arg1: i32) -> (i32, i32, i32, i32) {
    %c8_i32 = arith.constant 8 : i32
    %0 = arith.muli %arg1, %c8_i32 : i32
    %c8_i32_0 = arith.constant 8 : i32
    %1 = arith.addi %0, %c8_i32_0 : i32
    %c1_i32 = arith.constant 1 : i32
    %2 = arith.addi %1, %c1_i32 : i32
    %c0_i32 = arith.constant 0 : i32
    %c0_i32_1 = arith.constant 0 : i32
    %c0_i32_2 = arith.constant 0 : i32
    return %arg0, %2, %c0_i32, %c0_i32_1 : i32, i32, i32, i32
  }
  func.func @transform_3(%arg0: i32, %arg1: i32) -> (i32, i32, i32, i32) {
    %c0_i32 = arith.constant 0 : i32
    %c0_i32_0 = arith.constant 0 : i32
    %c0_i32_1 = arith.constant 0 : i32
    %c0_i32_2 = arith.constant 0 : i32
    %c0_i32_3 = arith.constant 0 : i32
    return %c0_i32, %c0_i32_0, %c0_i32_1, %c0_i32_2 : i32, i32, i32, i32
  }
  func.func @transform_4(%arg0: i32, %arg1: i32) -> (i32, i32, i32, i32) {
    %c0_i32 = arith.constant 0 : i32
    %c0_i32_0 = arith.constant 0 : i32
    %c0_i32_1 = arith.constant 0 : i32
    return %arg0, %arg1, %c0_i32, %c0_i32_0 : i32, i32, i32, i32
  }
  func.func @transform_5(%arg0: i32, %arg1: i32) -> (i32, i32, i32, i32) {
    %c0_i32 = arith.constant 0 : i32
    %c0_i32_0 = arith.constant 0 : i32
    %c0_i32_1 = arith.constant 0 : i32
    return %arg0, %arg1, %c0_i32, %c0_i32_0 : i32, i32, i32, i32
  }
}

module attributes {stable_mosaic.version = 11 : i64} {
  func.func @_bn_relu_kernel(%arg0: i32, %arg1: i32, %arg2: memref<1x8x16x128xf32, #tpu.memory_space<vmem>>, %arg3: memref<1x128xf32, #tpu.memory_space<vmem>>, %arg4: memref<1x128xf32, #tpu.memory_space<vmem>>, %arg5: memref<1x8x16x128xf32, #tpu.memory_space<vmem>>) attributes {dimension_semantics = [#tpu.dimension_semantics<parallel>, #tpu.dimension_semantics<parallel>], iteration_bounds = array<i64: 2, 2>, scalar_prefetch = 0 : i64, scratch_operands = 0 : i64, tpu.core_type = #tpu.core_type<tc>, window_params = [{transform_indices = @transform_0, window_bounds = array<i64: 1, 8, 16, 128>}, {pipeline_mode = #tpu.pipeline_mode<synchronous>, transform_indices = @transform_1, window_bounds = array<i64: 1, 128>}, {pipeline_mode = #tpu.pipeline_mode<synchronous>, transform_indices = @transform_2, window_bounds = array<i64: 1, 128>}, {transform_indices = @transform_3, window_bounds = array<i64: 1, 8, 16, 128>}]} {
    %c0 = arith.constant 0 : index
    %c0_0 = arith.constant 0 : index
    %0 = vector.load %arg3[%c0, %c0_0] : memref<1x128xf32, #tpu.memory_space<vmem>>, vector<1x128xf32>
    %1 = vector.shape_cast %0 : vector<1x128xf32> to vector<1x1x1x128xf32>
    %c0_1 = arith.constant 0 : index
    %c0_2 = arith.constant 0 : index
    %2 = vector.load %arg4[%c0_1, %c0_2] : memref<1x128xf32, #tpu.memory_space<vmem>>, vector<1x128xf32>
    %3 = vector.shape_cast %2 : vector<1x128xf32> to vector<1x1x1x128xf32>
    %c0_3 = arith.constant 0 : index
    %c0_4 = arith.constant 0 : index
    %c0_5 = arith.constant 0 : index
    %c0_6 = arith.constant 0 : index
    %4 = vector.load %arg2[%c0_3, %c0_4, %c0_5, %c0_6] : memref<1x8x16x128xf32, #tpu.memory_space<vmem>>, vector<1x8x16x128xf32>
    %5 = vector.broadcast %1 : vector<1x1x1x128xf32> to vector<1x8x16x128xf32>
    %6 = arith.mulf %4, %5 : vector<1x8x16x128xf32>
    %7 = vector.broadcast %3 : vector<1x1x1x128xf32> to vector<1x8x16x128xf32>
    %8 = arith.addf %6, %7 : vector<1x8x16x128xf32>
    %cst = arith.constant 0.000000e+00 : f32
    %9 = vector.broadcast %cst : f32 to vector<1x8x16x128xf32>
    %10 = arith.maximumf %8, %9 : vector<1x8x16x128xf32>
    %c0_7 = arith.constant 0 : index
    %c0_8 = arith.constant 0 : index
    %c0_9 = arith.constant 0 : index
    %c0_10 = arith.constant 0 : index
    %11 = vector.load %arg5[%c0_7, %c0_8, %c0_9, %c0_10] : memref<1x8x16x128xf32, #tpu.memory_space<vmem>>, vector<1x8x16x128xf32>
    tpu.vector_store %arg5[%c0_7, %c0_8, %c0_9, %c0_10], %10 {strides = array<i32>} : memref<1x8x16x128xf32, #tpu.memory_space<vmem>>, vector<1x8x16x128xf32>,
    return
  }
  func.func @transform_0(%arg0: i32, %arg1: i32) -> (i32, i32, i32, i32) {
    %c0_i32 = arith.constant 0 : i32
    %c0_i32_0 = arith.constant 0 : i32
    %c0_i32_1 = arith.constant 0 : i32
    return %arg0, %arg1, %c0_i32, %c0_i32_0 : i32, i32, i32, i32
  }
  func.func @transform_1(%arg0: i32, %arg1: i32) -> (i32, i32) {
    %c0_i32 = arith.constant 0 : i32
    %c0_i32_0 = arith.constant 0 : i32
    %c0_i32_1 = arith.constant 0 : i32
    return %c0_i32, %c0_i32_0 : i32, i32
  }
  func.func @transform_2(%arg0: i32, %arg1: i32) -> (i32, i32) {
    %c0_i32 = arith.constant 0 : i32
    %c0_i32_0 = arith.constant 0 : i32
    %c0_i32_1 = arith.constant 0 : i32
    return %c0_i32, %c0_i32_0 : i32, i32
  }
  func.func @transform_3(%arg0: i32, %arg1: i32) -> (i32, i32, i32, i32) {
    %c0_i32 = arith.constant 0 : i32
    %c0_i32_0 = arith.constant 0 : i32
    %c0_i32_1 = arith.constant 0 : i32
    return %arg0, %arg1, %c0_i32, %c0_i32_0 : i32, i32, i32, i32
  }
}

</mosaic_0001>

<bundles_post_ra>
// kernel: conv_bn_relu.3
= control target key start
LH: loop header
LB: loop body
LE: loop exit
PB: predicated region body
PF: predicated region fallthrough
CT: control target
= control target key end

     0   :  { %s525_s12 = smov 0   ;;  %s527_s13 = smov 0   ;;  %s654_s0 = inlined_call_operand.vmem [shape: f32[2,16,16,128], index: 0, kind: input, shape index: {}]   ;;  %s655_s1 = inlined_call_operand.vmem [shape: f32[1,128], index: 1, kind: input, shape index: {}]   ;;  %s656_s2 = inlined_call_operand.vmem [shape: f32[1,128], index: 2, kind: input, shape index: {}]   ;;  %s657_s3 = inlined_call_operand.vmem [shape: f32[2,16,16,128], index: 3, kind: output, shape index: {}]  }
   0x1   :  { %s529_s14 = smov 0   ;;  %s531_s15 = smov 0  }
   0x2   :  { %s533_s16 = smov 0  }
   0x3 LB: > { %s22_s17 = sadd.s32 1, %s495_s14  ;;  %s25_s18 = sadd.s32 1, %s499_s15  ;;  %s503_s16 = sphi %s533_s16, %s13_s16   ;;  %s499_s15 = sphi %s531_s15, %s661_s15   ;;  %s495_s14 = sphi %s529_s14, %s660_s14   ;;  %s491_s13 = sphi %s527_s13, %s659_s13   ;;  %s487_s12 = sphi %s525_s12, %s658_s12  }
   0x4   : > { %p23_p0 = scmp.ge.s32.totalorder %s22_s17, 2  ;;  %p412_p1 = scmp.ge.s32.totalorder %s503_s16, 1 }
   0x5   : > { %p159_p2 = scmp.lt.s32.totalorder %s503_s16, 5 }
   0x6   : > { %s663_s17 = smov (%p23_p0, %s22_s17), 0  ;;  %s665_s18 = smov (!%p23_p0, %s25_s18), %s499_s15 }
   0x7   : > { %p160_p3 = pnand %p412_p1, %p159_p2  ;;  %p27_p4 = scmp.ge.s32.totalorder %s665_s18, 2 }
   0x8   : > { %s413_s19 = sshll.u32 (!%p160_p3), %s487_s12, 3  ;;  %p194_p5 = scmp.lt.s32.totalorder (!%p160_p3), %s491_s13, 1  ;;  %v558_v0 = vld [vmem:[%s655_s1] ss:$0 sm:$0xff] (!%p160_p3) }
   0x9   : > { %s667_s18 = smov (%p27_p4, %s665_s18), 0  ;;  %163 = sbr.rel (%p160_p3) target bundleno = 39 (0x27), region = 32 }
   0xa   : > { %p196_p6 = scmp.lt.s32.totalorder (!%p160_p3), %s413_s19, 15  ;;  %v568_v1 = vld [vmem:[%s656_s2] ss:$0 sm:$0xff] (!%p160_p3) }
  0x10   : > { %s669_s13 = smov (!%p194_p5, %s491_s13), 1  ;;  %s671_s19 = smov (!%p196_p6, %s413_s19), 15 }
  0x11   : > { %s415_s20 = sshll.u32 %s669_s13, 5  ;;  %s414_s21 = sshll.u32 %s671_s19, 1 }
  0x12   : > { %s200_s22 = sadd.s32 %s415_s20, %s414_s21 }
  0x13   : > { %s416_s23 = sshll.u32 %s200_s22, 3 }
  0x14   : > { %s563_s28 = scalar_lea.vmem %s654_s0, %s416_s23  ;;  %s591_s6 = scalar_lea.vmem %s657_s3, %s416_s23 }
  0x15   : > { %v217_v2 = vld [vmem:[%s563_s28] sm:$0xff]  ;;  %v218_v3 = vld [vmem:[%s563_s28 + $0x8] sm:$0xff]  ;;  %v219_v4 = vld [vmem:[%s563_s28 + $0x10] sm:$0xff] }
  0x16   : > { %v239_v5 = vmul.f32 %v558_v0, %v217_v2  ;;  %v240_v6 = vmul.f32 %v558_v0, %v218_v3  ;;  %v241_v7 = vmul.f32 %v558_v0, %v219_v4  ;;  %v220_v8 = vld [vmem:[%s563_s28 + $0x18] sm:$0xff]  ;;  %v221_v9 = vld [vmem:[%s563_s28 + $0x20] sm:$0xff]  ;;  %v222_v10 = vld [vmem:[%s563_s28 + $0x28] sm:$0xff] }
  0x17   : > { %v242_v11 = vmul.f32 %v558_v0, %v220_v8  ;;  %v243_v12 = vmul.f32 %v558_v0, %v221_v9  ;;  %v244_v13 = vmul.f32 %v558_v0, %v222_v10  ;;  %v223_v14 = vld [vmem:[%s563_s28 + $0x30] sm:$0xff]  ;;  %v224_v15 = vld [vmem:[%s563_s28 + $0x38] sm:$0xff]  ;;  %v225_v24 = vld [vmem:[%s563_s28 + $0x40] sm:$0xff] }
  0x18   : > { %v261_v16 = vadd.f32 %v568_v1, %v239_v5  ;;  %v262_v17 = vadd.f32 %v568_v1, %v240_v6  ;;  %v263_v18 = vadd.f32 %v568_v1, %v241_v7  ;;  %v245_v19 = vmul.f32 %v558_v0, %v223_v14  ;;  %v226_v25 = vld [vmem:[%s563_s28 + $0x48] sm:$0xff]  ;;  %v227_v26 = vld [vmem:[%s563_s28 + $0x50] sm:$0xff]  ;;  %v228_v31 = vld [vmem:[%s563_s28 + $0x58] sm:$0xff] }
  0x19   : > { %v264_v20 = vadd.f32 %v568_v1, %v242_v11  ;;  %v265_v21 = vadd.f32 %v568_v1, %v243_v12  ;;  %v266_v22 = vadd.f32 %v568_v1, %v244_v13  ;;  %v246_v23 = vmul.f32 %v558_v0, %v224_v15  ;;  %v229_v32 = vld [vmem:[%s563_s28 + $0x60] sm:$0xff]  ;;  %v230_v33 = vld [vmem:[%s563_s28 + $0x68] sm:$0xff]  ;;  %v231_v38 = vld [vmem:[%s563_s28 + $0x70] sm:$0xff] }
  0x1a   : > { %v277_v27 = vmax.f32 %v261_v16, 0.0  ;;  %v278_v28 = vmax.f32 %v262_v17, 0.0  ;;  %v279_v29 = vmax.f32 %v263_v18, 0.0  ;;  %v267_v30 = vadd.f32 %v568_v1, %v245_v19  ;;  %v232_v43 = vld [vmem:[%s563_s28 + $0x78] sm:$0xff] }
  0x1b   : > { %v280_v34 = vmax.f32 %v264_v20, 0.0  ;;  %v281_v35 = vmax.f32 %v265_v21, 0.0  ;;  %v282_v36 = vmax.f32 %v266_v22, 0.0  ;;  %v268_v37 = vadd.f32 %v568_v1, %v246_v23 }
  0x1c   : > { %293 = vst [vmem:[%s591_s6] sm:$0xff] %v277_v27  ;;  %294 = vst [vmem:[%s591_s6 + $0x8] sm:$0xff] %v278_v28  ;;  %v283_v39 = vmax.f32 %v267_v30, 0.0  ;;  %v247_v40 = vmul.f32 %v558_v0, %v225_v24  ;;  %v248_v41 = vmul.f32 %v558_v0, %v226_v25  ;;  %v249_v42 = vmul.f32 %v558_v0, %v227_v26 }
  0x1d   : > { %295 = vst [vmem:[%s591_s6 + $0x10] sm:$0xff] %v279_v29  ;;  %296 = vst [vmem:[%s591_s6 + $0x18] sm:$0xff] %v280_v34  ;;  %v284_v44 = vmax.f32 %v268_v37, 0.0  ;;  %v250_v45 = vmul.f32 %v558_v0, %v228_v31  ;;  %v251_v46 = vmul.f32 %v558_v0, %v229_v32  ;;  %v252_v47 = vmul.f32 %v558_v0, %v230_v33 }
  0x1e   : > { %297 = vst [vmem:[%s591_s6 + $0x20] sm:$0xff] %v281_v35  ;;  %298 = vst [vmem:[%s591_s6 + $0x28] sm:$0xff] %v282_v36  ;;  %v269_v48 = vadd.f32 %v568_v1, %v247_v40  ;;  %v270_v49 = vadd.f32 %v568_v1, %v248_v41  ;;  %v271_v50 = vadd.f32 %v568_v1, %v249_v42 }
  0x1f   : > { %299 = vst [vmem:[%s591_s6 + $0x30] sm:$0xff] %v283_v39  ;;  %v253_v51 = vmul.f32 %v558_v0, %v231_v38  ;;  %300 = vst [vmem:[%s591_s6 + $0x38] sm:$0xff] %v284_v44  ;;  %v272_v52 = vadd.f32 %v568_v1, %v250_v45  ;;  %v273_v53 = vadd.f32 %v568_v1, %v251_v46 }
  0x20   : > { %v274_v54 = vadd.f32 %v568_v1, %v252_v47  ;;  %v254_v55 = vmul.f32 %v558_v0, %v232_v43  ;;  %v285_v56 = vmax.f32 %v269_v48, 0.0  ;;  %v286_v57 = vmax.f32 %v270_v49, 0.0 }
  0x21   : > { %v287_v58 = vmax.f32 %v271_v50, 0.0  ;;  %v275_v59 = vadd.f32 %v568_v1, %v253_v51  ;;  %v288_v60 = vmax.f32 %v272_v52, 0.0  ;;  %v289_v61 = vmax.f32 %v273_v53, 0.0 }
  0x22   : > { %v290_v62 = vmax.f32 %v274_v54, 0.0  ;;  %v276_v63 = vadd.f32 %v568_v1, %v254_v55  ;;  %301 = vst [vmem:[%s591_s6 + $0x40] sm:$0xff] %v285_v56  ;;  %302 = vst [vmem:[%s591_s6 + $0x48] sm:$0xff] %v286_v57 }
  0x23   : > { %303 = vst [vmem:[%s591_s6 + $0x50] sm:$0xff] %v287_v58  ;;  %v291_v2 = vmax.f32 %v275_v59, 0.0  ;;  %304 = vst [vmem:[%s591_s6 + $0x58] sm:$0xff] %v288_v60 }
  0x24   : > { %305 = vst [vmem:[%s591_s6 + $0x60] sm:$0xff] %v289_v61  ;;  %306 = vst [vmem:[%s591_s6 + $0x68] sm:$0xff] %v290_v62  ;;  %v292_v0 = vmax.f32 %v276_v63, 0.0 }
  0x25   : > { %307 = vst [vmem:[%s591_s6 + $0x70] sm:$0xff] %v291_v2 }
  0x26   : > { %308 = vst [vmem:[%s591_s6 + $0x78] sm:$0xff] %v292_v0 }
  0x27 PF: > { %s13_s16 = sadd.s32 1, %s503_s16   ;;  %s658_s12 = smov %s495_s14 }
  0x28   : > { %p10_p7 = scmp.ge.s32.totalorder %s13_s16, 6   ;;  %s659_s13 = smov %s499_s15 }
  0x29   : > { %s660_s14 = smov %s663_s17  ;;  %s661_s15 = smov %s667_s18 }
  0x2a   :  { %12 = sbr.rel (!%p10_p7) target bundleno = 3 (0x3), region = 62 }

// kernel: conv_bn_relu.2
= control target key start
LH: loop header
LB: loop body
LE: loop exit
PB: predicated region body
PF: predicated region fallthrough
CT: control target
= control target key end

     0   :  { %s3597_s18 = smov 0   ;;  %s3599_s19 = smov 0   ;;  %s4199_s0 = inlined_call_operand.vmem [shape: f32[2,18,18,4], index: 0, kind: input, shape index: {}, may-alias: {0,1,2}]   ;;  %s4200_s1 = inlined_call_operand.vmem [shape: f32[2,18,18,4], index: 1, kind: input, shape index: {}, may-alias: {0,1,2}]   ;;  %s4201_s2 = inlined_call_operand.vmem [shape: f32[2,18,18,4], index: 2, kind: input, shape index: {}, may-alias: {0,1,2}]   ;;  %s4202_s3 = inlined_call_operand.vmem [shape: f32[3,3,4,128], index: 3, kind: input, shape index: {}]   ;;  %s4203_s4 = inlined_call_operand.vmem [shape: f32[2,16,16,128], index: 4, kind: output, shape index: {0}]   ;;  %s4204_s5 = inlined_call_operand.vmem [shape: f32[2,2,8,128], index: 5, kind: output, shape index: {1}]  }
   0x1   :  { %s3601_s20 = smov 0   ;;  %s3603_s21 = smov 0  }
   0x2   :  { %s3605_s22 = smov 0  }
   0x3 LB: > { %s25_s23 = sadd.s32 1, %s3556_s20  ;;  %s28_s24 = sadd.s32 1, %s3560_s21  ;;  %s3564_s22 = sphi %s3605_s22, %s16_s22   ;;  %s3560_s21 = sphi %s3603_s21, %s4210_s21   ;;  %s3556_s20 = sphi %s3601_s20, %s4209_s20   ;;  %s3552_s19 = sphi %s3599_s19, %s4208_s19   ;;  %s3548_s18 = sphi %s3597_s18, %s4207_s18  }
   0x4   : > { %p26_p0 = scmp.ge.s32.totalorder %s25_s23, 2  ;;  %p2788_p1 = scmp.ge.s32.totalorder %s3564_s22, 1 }
   0x5   : > { %p272_p2 = scmp.lt.s32.totalorder %s3564_s22, 5 }
   0x6   : > { %s4212_s23 = smov (%p26_p0, %s25_s23), 0  ;;  %s4214_s24 = smov (!%p26_p0, %s28_s24), %s3560_s21 }
   0x7   : > { %p273_p3 = pnand %p2788_p1, %p272_p2  ;;  %p30_p4 = scmp.ge.s32.totalorder %s4214_s24, 2 }
   0x8   : > { %v2801_v0 = vld [vmem:[%s4202_s3 + $0x4] sm:$0xf] (!%p273_p3)  ;;  %vm558_vm0 = vcmask (!%p273_p3), 1043456   ;;  %v3635_v1 = vld [vmem:[%s4202_s3 + $0x10] sm:$0xf] (!%p273_p3)  ;;  %s3638_s29 = sshll.u32 (!%p273_p3), %s3548_s18, 3 }
   0x9   : > { %s4216_s24 = smov (%p30_p4, %s4214_s24), 0  ;;  %276 = sbr.rel (%p273_p3) target bundleno = 412 (0x19c), region = 36 }
   0xa   : > { %3117 = vmatprep.subr.msk.mxu1 (!%p273_p3), %vm558_vm0, %v2801_v0  ;;  %3221 = vmatprep.subr.msk.mxu0 (!%p273_p3), %vm558_vm0, %v3635_v1  ;;  %p351_p5 = scmp.lt.s32.totalorder (!%p273_p3), %s3552_s19, 1  ;;  %p353_p6 = scmp.lt.s32.totalorder (!%p273_p3), %s3638_s29, 17  ;;  %v3647_v2 = vld [vmem:[%s4202_s3] sm:$0xf] (!%p273_p3)  ;;  %v3655_v3 = vld [vmem:[%s4202_s3 + $0x14] sm:$0xf] (!%p273_p3) }
   0xb   : > { %3118 = vmatpush3.msk.msra.mxu1 (!%p273_p3), %vm558_vm0, %v2801_v0  ;;  %3222 = vmatpush3.msk.msra.mxu0 (!%p273_p3), %vm558_vm0, %v3635_v1  ;;  %s367_s12 = sadd.s32 (!%p273_p3), 8, %s3638_s29  ;;  %vm435_vm1 = vcmask (!%p273_p3), 31744   ;;  %vm438_vm2 = vcmask (!%p273_p3), 25600   ;;  %s380_s26 = sadd.s32 (!%p273_p3), 9, %s3638_s29  ;;  %v2908_v33 = vld [vmem:[%s4202_s3 + $0x18] sm:$0xf] (!%p273_p3) }
   0xc   : > { %3143 = vmatprep.subr.msk.mxu1 (!%p273_p3), %vm558_vm0, %v3647_v2  ;;  %3247 = vmatprep.subr.msk.mxu0 (!%p273_p3), %vm558_vm0, %v3655_v3  ;;  %p3674_p7 = scmp.lt.s32.totalorder (!%p273_p3), %s367_s12, 17  ;;  %p3712_p8 = scmp.lt.s32.totalorder (!%p273_p3), %s380_s26, 17  ;;  %v3756_v34 = vld [vmem:[%s4202_s3 + $0x8] sm:$0xf] (!%p273_p3)  ;;  %v3823_v50 = vld [vmem:[%s4202_s3 + $0x1c] sm:$0xf] (!%p273_p3) }
   0xd   : > { %p405_p9 = scmp.lt.s32.totalorder (!%p273_p3), %s3548_s18, 1  ;;  %p395_p10 = scmp.lt.s32.totalorder (!%p273_p3), %s3638_s29, 15 }
  0x10   : > { %s4218_s19 = smov (!%p351_p5, %s3552_s19), 1  ;;  %s4220_s12 = smov (!%p3674_p7, %s367_s12), 17 }
  0x11   : > { %s354_s9 = scalar_select %p353_p6, %s3638_s29, 17 }
  0x12   : > { %s3665_s10 = smul.u32 54, %s4218_s19  ;;  %s4222_s26 = smov (!%p3712_p8, %s380_s26), 17 }
  0x13   : > { %s3481_s11 = smul.u32 3, %s354_s9  ;;  %s4224_s18 = smov (!%p405_p9, %s3548_s18), 1 }
  0x14   : > { %s3483_s28 = smul.u32 3, %s4220_s12  ;;  %s4226_s29 = smov (!%p395_p10, %s3638_s29), 15 }
  0x15   : > { %s357_s13 = sadd.s32 %s3665_s10, %s3481_s11  ;;  %s3484_s11 = smul.u32 3, %s4222_s26 }
  0x16   : > { %s2790_s14 = sshll.u32 %s357_s13, 3  ;;  %s374_s9 = sadd.s32 %s3483_s28, %s3665_s10 }
  0x17   : > { %s3672_s17 = scalar_lea.vmem %s4199_s0, %s2790_s14  ;;  %s2792_s12 = sshll.u32 %s374_s9, 3 }
  0x18   : > { %v411_v4 = vld [vmem:[%s3672_s17] sm:$0xff]  ;;  %v412_v5 = vld [vmem:[%s3672_s17 + $0x8] sm:$0xff]  ;;  %v414_v6 = vld [vmem:[%s3672_s17 + $0x18] sm:$0xff]  ;;  %s387_s13 = sadd.s32 %s3484_s11, %s3665_s10  ;;  %s376_s16 = scalar_lea.vmem %s4200_s1, %s2792_s12 }
  0x19   : > { %436 = vst.msk [vmem:[#allocation2] sm:$0xff] %vm435_vm1, %v411_v4  ;;  %437 = vst.msk [vmem:[#allocation2 + $0x8] sm:$0xff] %vm435_vm1, %v412_v5  ;;  %v415_v7 = vld [vmem:[%s3672_s17 + $0x20] sm:$0xff]  ;;  %v413_v8 = vld [vmem:[%s3672_s17 + $0x10] sm:$0x3]  ;;  %s2799_s9 = sshll.u32 %s4218_s19, 1 }
  0x1a   : > { %440 = vst.msk [vmem:[#allocation2 + $0x18] sm:$0xff] %vm435_vm1, %v414_v6  ;;  %v416_v9 = vld [vmem:[%s3672_s17 + $0x28] sm:$0x3]  ;;  %441 = vst.msk [vmem:[#allocation2 + $0x20] sm:$0xff] %vm435_vm1, %v415_v7  ;;  %v417_v10 = vld [vmem:[%s3672_s17 + $0x30] sm:$0xff]  ;;  %s408_s11 = sadd.s32 %s2799_s9, %s4224_s18 }
  0x1b   : > { %439 = vst.msk [vmem:[#allocation2 + $0x10] sm:$0x3] %vm438_vm2, %v413_v8  ;;  %442 = vst.msk [vmem:[#allocation2 + $0x28] sm:$0x3] %vm438_vm2, %v416_v9  ;;  %v418_v11 = vld [vmem:[%s3672_s17 + $0x38] sm:$0xff]  ;;  %v420_v13 = vld [vmem:[%s3672_s17 + $0x48] sm:$0xff] }
  0x1c   : > { %v419_v12 = vld [vmem:[%s3672_s17 + $0x40] sm:$0x3]  ;;  %443 = vst.msk [vmem:[#allocation2 + $0x30] sm:$0xff] %vm435_vm1, %v417_v10  ;;  %444 = vst.msk [vmem:[#allocation2 + $0x38] sm:$0xff] %vm435_vm1, %v418_v11  ;;  %v421_v14 = vld [vmem:[%s3672_s17 + $0x50] sm:$0xff]  ;;  %s2800_s12 = sshll.u32 %s408_s11, 3 }
  0x1d   : > { %445 = vst.msk [vmem:[#allocation2 + $0x40] sm:$0x3] %vm438_vm2, %v419_v12  ;;  %v422_v15 = vld [vmem:[%s3672_s17 + $0x58] sm:$0x3]  ;;  %v423_v16 = vld [vmem:[%s3672_s17 + $0x60] sm:$0xff]  ;;  %v424_v17 = vld [vmem:[%s3672_s17 + $0x68] sm:$0xff]  ;;  %s4155_s15 = scalar_lea.vmem %s4204_s5, %s2800_s12 }
  0x1e   : > { %446 = vst.msk [vmem:[#allocation2 + $0x48] sm:$0xff] %vm435_vm1, %v420_v13  ;;  %447 = vst.msk [vmem:[#allocation2 + $0x50] sm:$0xff] %vm435_vm1, %v421_v14  ;;  %v425_v18 = vld [vmem:[%s3672_s17 + $0x70] sm:$0x3]  ;;  %v426_v19 = vld [vmem:[%s3672_s17 + $0x78] sm:$0xff] }
  0x1f   : > { %448 = vst.msk [vmem:[#allocation2 + $0x58] sm:$0x3] %vm438_vm2, %v422_v15  ;;  %451 = vst.msk [vmem:[#allocation2 + $0x70] sm:$0x3] %vm438_vm2, %v425_v18  ;;  %v427_v20 = vld [vmem:[%s3672_s17 + $0x80] sm:$0xff]  ;;  %v429_v22 = vld [vmem:[%s3672_s17 + $0x90] sm:$0xff] }
  0x20   : > { %449 = vst.msk [vmem:[#allocation2 + $0x60] sm:$0xff] %vm435_vm1, %v423_v16  ;;  %450 = vst.msk [vmem:[#allocation2 + $0x68] sm:$0xff] %vm435_vm1, %v424_v17  ;;  %v428_v21 = vld [vmem:[%s3672_s17 + $0x88] sm:$0x3]  ;;  %v430_v23 = vld [vmem:[%s3672_s17 + $0x98] sm:$0xff] }
  0x21   : > { %452 = vst.msk [vmem:[#allocation2 + $0x78] sm:$0xff] %vm435_vm1, %v426_v19  ;;  %453 = vst.msk [vmem:[#allocation2 + $0x80] sm:$0xff] %vm435_vm1, %v427_v20  ;;  %v431_v24 = vld [vmem:[%s3672_s17 + $0xa0] sm:$0x3]  ;;  %v432_v25 = vld [vmem:[%s3672_s17 + $0xa8] sm:$0xff] }
  0x22   : > { %454 = vst.msk [vmem:[#allocation2 + $0x88] sm:$0x3] %vm438_vm2, %v428_v21  ;;  %457 = vst.msk [vmem:[#allocation2 + $0xa0] sm:$0x3] %vm438_vm2, %v431_v24  ;;  %v433_v26 = vld [vmem:[%s3672_s17 + $0xb0] sm:$0xff]  ;;  %v492_v28 = vld [vmem:[#allocation2 + $0x1] sm:$0xff] }
  0x23   : > { %455 = vst.msk [vmem:[#allocation2 + $0x90] sm:$0xff] %vm435_vm1, %v429_v22  ;;  %456 = vst.msk [vmem:[#allocation2 + $0x98] sm:$0xff] %vm435_vm1, %v430_v23  ;;  %v434_v27 = vld [vmem:[%s3672_s17 + $0xb8] sm:$0x3]  ;;  %3119 = vmatprep.mubr.msk.f32.mxu1 %vm435_vm1, %v492_v28  ;;  %v493_v30 = vld [vmem:[#allocation2 + $0x9] sm:$0xff]  ;;  %s2794_s17 = sshll.u32 %s387_s13, 3 }
  0x24   : > { %458 = vst.msk [vmem:[#allocation2 + $0xa8] sm:$0xff] %vm435_vm1, %v432_v25  ;;  %459 = vst.msk [vmem:[#allocation2 + $0xb0] sm:$0xff] %vm435_vm1, %v433_v26  ;;  %v1364_v29 = vld [vmem:[#allocation2 + $0x19] sm:$0xff]  ;;  %v1365_v31 = vld [vmem:[#allocation2 + $0x21] sm:$0xff]  ;;  %3120 = vmatmul.mubr.msk.f32.vlgmr.msra.gmra.mrb[0].mxu1 %vm435_vm1, %v493_v30  ;;  %s389_s26 = scalar_lea.vmem %s4201_s2, %s2794_s17  ;;  %s2797_s17 = sshll.u32 %s4218_s19, 5 }
  0x25   : > { %460 = vst.msk [vmem:[#allocation2 + $0xb8] sm:$0x3] %vm438_vm2, %v434_v27  ;;  %3223 = vmatprep.mubr.msk.f32.mxu0 %vm435_vm1, %v1364_v29  ;;  %v3745_v32 = vld [vmem:[#allocation2 + $0x31] sm:$0xff]  ;;  %3144 = vmatpush3.msk.msra.mxu1 %vm558_vm0, %v3647_v2  ;;  %v3762_v35 = vld [vmem:[#allocation2 + $0x39] sm:$0xff]  ;;  %v3766_v36 = vld [vmem:[#allocation2 + $0x49] sm:$0xff] }
  0x26   : > { %3224 = vmatmul.mubr.msk.f32.vlgmr.msra.gmra.mrb[0].mxu0 %vm435_vm1, %v1365_v31  ;;  %3122 = vmatprep.mubr.msk.f32.mxu1 %vm435_vm1, %v1364_v29  ;;  %v3778_v37 = vld [vmem:[#allocation2 + $0x51] sm:$0xff]  ;;  %v461_v40 = vld [vmem:[%s376_s16] sm:$0xff]  ;;  %v462_v41 = vld [vmem:[%s376_s16 + $0x8] sm:$0xff] }
  0x27   : > { %3248 = vmatpush3.msk.msra.mxu0 %vm558_vm0, %v3655_v3  ;;  %3226 = vmatprep.mubr.msk.f32.mxu0 %vm435_vm1, %v3745_v32  ;;  %v3781_v38 = vld [vmem:[#allocation2 + $0x61] sm:$0xff]  ;;  %v3794_v39 = vld [vmem:[#allocation2 + $0x69] sm:$0xff]  ;;  %465 = vst.msk [vmem:[#allocation2 + $0xc0] sm:$0xff] %vm435_vm1, %v461_v40  ;;  %466 = vst.msk [vmem:[#allocation2 + $0xc8] sm:$0xff] %vm435_vm1, %v462_v41 }
  0x28   : > { %3273 = vmatprep.subr.msk.mxu0 %vm558_vm0, %v2908_v33  ;;  %3123 = vmatmul.mubr.msk.f32.gmra.mrb[2].mxu1 %vm435_vm1, %v1365_v31  ;;  %v3796_v42 = vld [vmem:[#allocation2 + $0x1a] sm:$0xff]  ;;  %v463_v43 = vld [vmem:[%s376_s16 + $0x10] sm:$0x3]  ;;  %v3812_v44 = vld [vmem:[#allocation2 + $0x22] sm:$0xff]  ;;  %s2796_s16 = sshll.u32 %s4226_s29, 1 }
  0x29   : > { %3169 = vmatprep.subr.msk.mxu1 %vm558_vm0, %v3756_v34  ;;  %3125 = vmatprep.mubr.msk.f32.mxu1 %vm435_vm1, %v3745_v32  ;;  %467 = vst.msk [vmem:[#allocation2 + $0xd0] sm:$0x3] %vm438_vm2, %v463_v43  ;;  %v3814_v45 = vld [vmem:[#allocation2 + $0x79] sm:$0xff]  ;;  %v469_v48 = vld [vmem:[%s389_s26 + $0x8] sm:$0xff]  ;;  %v470_v49 = vld [vmem:[%s389_s26 + $0x10] sm:$0x3]  ;;  %s399_s18 = sadd.s32 %s2797_s17, %s2796_s16 }
  0x2a   : > { %3227 = vmatmul.mubr.msk.f32.gmra.mrb[2].mxu0 %vm435_vm1, %v3762_v35  ;;  %v3816_v46 = vld [vmem:[#allocation2 + $0x32] sm:$0xff]  ;;  %v468_v47 = vld [vmem:[%s389_s26] sm:$0xff]  ;;  %473 = vst.msk [vmem:[#allocation2 + $0xe0] sm:$0xff] %vm435_vm1, %v469_v48  ;;  %v3841_v54 = vld [vmem:[#allocation2 + $0x4a] sm:$0xff]  ;;  %s2798_s10 = sshll.u32 %s399_s18, 3 }
  0x2b   : > { %3229 = vmatprep.mubr.msk.f32.mxu0 %vm435_vm1, %v3766_v36  ;;  %472 = vst.msk [vmem:[#allocation2 + $0xd8] sm:$0xff] %vm435_vm1, %v468_v47  ;;  %v3832_v51 = vld [vmem:[#allocation2 + $0x81] sm:$0xff]  ;;  %v3839_v53 = vld [vmem:[#allocation2 + $0x91] sm:$0xff]  ;;  %v3851_v55 = vld [vmem:[#allocation2 + $0x99] sm:$0xff]  ;;  %s4164_s27 = scalar_lea.vmem %s4203_s4, %s2798_s10 }
  0x2c   : > { %3126 = vmatmul.mubr.msk.f32.gmra.mrb[4].mxu1 %vm435_vm1, %v3762_v35  ;;  %474 = vst.msk [vmem:[#allocation2 + $0xe8] sm:$0x3] %vm438_vm2, %v470_v49  ;;  %v3837_v52 = vld [vmem:[#allocation2 + $0x3a] sm:$0xff]  ;;  %v3855_v56 = vld [vmem:[#allocation2 + $0x52] sm:$0xff]  ;;  %v3857_v57 = vld [vmem:[#allocation2 + $0xa9] sm:$0xff] }
  0x2d   : > { %3128 = vmatprep.mubr.msk.f32.mxu1 %vm435_vm1, %v3766_v36  ;;  %v3859_v58 = vld [vmem:[#allocation2 + $0x62] sm:$0xff]  ;;  %v3867_v59 = vld [vmem:[#allocation2 + $0xb1] sm:$0xff]  ;;  %v3873_v62 = vld [vmem:[#allocation2 + $0x7a] sm:$0xff] }
  0x2e   : > { %3230 = vmatmul.mubr.msk.f32.gmra.mrb[4].mxu0 %vm435_vm1, %v3778_v37  ;;  %v3871_v60 = vld [vmem:[#allocation2 + $0x6a] sm:$0xff]  ;;  %v475_v61 = vld [vmem:[#allocation2] sm:$0xff]  ;;  %v3884_v2 = vld [vmem:[#allocation2 + $0x18] sm:$0xff] }
  0x2f   : > { %3232 = vmatprep.mubr.msk.f32.mxu0 %vm435_vm1, %v3781_v38  ;;  %v476_v63 = vld [vmem:[#allocation2 + $0x8] sm:$0xff]  ;;  %v3886_v3 = vld [vmem:[#allocation2 + $0x92] sm:$0xff]  ;;  %v3896_v5 = vld [vmem:[#allocation2 + $0x20] sm:$0xff] }
  0x30   : > { %3129 = vmatmul.mubr.msk.f32.gmra.mrb[6].mxu1 %vm435_vm1, %v3778_v37  ;;  %v3882_v0 = vld [vmem:[#allocation2 + $0x82] sm:$0xff]  ;;  %v2854_v4 = vld [vmem:[%s4202_s3 + $0xc] sm:$0xf]  ;;  %v3902_v6 = vld [vmem:[#allocation2 + $0x9a] sm:$0xff] }
  0x31   : > { %3131 = vmatprep.mubr.msk.f32.mxu1 %vm435_vm1, %v3781_v38  ;;  %v3904_v7 = vld [vmem:[#allocation2 + $0x30] sm:$0xff]  ;;  %v3915_v9 = vld [vmem:[#allocation2 + $0x38] sm:$0xff]  ;;  %v3921_v11 = vld [vmem:[#allocation2 + $0x48] sm:$0xff] }
  0x32   : > { %3233 = vmatmul.mubr.msk.f32.gmra.mrb[6].mxu0 %vm435_vm1, %v3794_v39  ;;  %v3906_v8 = vld [vmem:[#allocation2 + $0xaa] sm:$0xff]  ;;  %v3919_v10 = vld [vmem:[#allocation2 + $0xb2] sm:$0xff]  ;;  %v3923_v12 = vld [vmem:[#allocation2 + $0xc2] sm:$0xff] }
  0x33   : > { %3249 = vmatprep.mubr.msk.f32.mxu0 %vm435_vm1, %v3796_v42  ;;  %v3931_v13 = vld [vmem:[#allocation2 + $0x50] sm:$0xff]  ;;  %v3937_v15 = vld [vmem:[#allocation2 + $0x60] sm:$0xff]  ;;  %v3945_v16 = vld [vmem:[#allocation2 + $0x68] sm:$0xff] }
  0x34   : > { %3132 = vmatmul.mubr.msk.f32.gmra.mrb[8].mxu1 %vm435_vm1, %v3794_v39  ;;  %v3935_v14 = vld [vmem:[#allocation2 + $0xca] sm:$0xff]  ;;  %v3949_v17 = vld [vmem:[#allocation2 + $0x78] sm:$0xff]  ;;  %v2944_v18 = vld [vmem:[%s4202_s3 + $0x20] sm:$0xf] }
  0x35   : > { %3134 = vmatprep.mubr.msk.f32.mxu1 %vm435_vm1, %v3814_v45  ;;  %v3960_v19 = vld [vmem:[#allocation2 + $0x80] sm:$0xff]  ;;  %v3966_v20 = vld [vmem:[#allocation2 + $0x90] sm:$0xff]  ;;  %v3975_v21 = vld [vmem:[#allocation2 + $0x98] sm:$0xff] }
  0x36   : > { %3250 = vmatmul.mubr.msk.f32.vlgmr.msra.gmra.mrb[0].mxu0 %vm435_vm1, %v3812_v44  ;;  %v3979_v22 = vld [vmem:[#allocation2 + $0xa8] sm:$0xff]  ;;  %v3987_v23 = vld [vmem:[#allocation2 + $0xb0] sm:$0xff]  ;;  %v4006_v26 = vld [vmem:[#allocation2 + $0xc0] sm:$0xff] }
  0x37   : > { %3274 = vmatpush3.msk.msra.mxu0 %vm558_vm0, %v2908_v33  ;;  %3252 = vmatprep.mubr.msk.f32.mxu0 %vm435_vm1, %v3816_v46  ;;  %v903_v24 = vld [vmem:[#allocation2 + $0x2] sm:$0xff]  ;;  %v904_v25 = vld [vmem:[#allocation2 + $0xa] sm:$0xff]  ;;  %v1839_v28 = vld [vmem:[#allocation2 + $0xd8] sm:$0xff] }
  0x38   : > { %3299 = vmatprep.subr.msk.mxu0 %vm558_vm0, %v3823_v50  ;;  %3135 = vmatmul.mubr.msk.f32.gmra.mrb[10].mxu1 %vm435_vm1, %v3832_v51  ;;  %v1838_v27 = vld [vmem:[#allocation2 + $0xc8] sm:$0xff]  ;;  %v1840_v29 = vld [vmem:[#allocation2 + $0xe0] sm:$0xff] }
  0x39   : > { %3137 = vmatprep.mubr.msk.f32.mxu1 %vm435_vm1, %v3839_v53  ;;  %v2067_v30 = vld [vmem:[#allocation2 + $0xc1] sm:$0xff]  ;;  %v2069_v31 = vld [vmem:[#allocation2 + $0xd9] sm:$0xff] }
  0x3a   : > { %3253 = vmatmul.mubr.msk.f32.gmra.mrb[2].mxu0 %vm435_vm1, %v3837_v52  ;;  %v2299_v33 = vld [vmem:[#allocation2 + $0xda] sm:$0xff] }
  0x3b   : > { %3255 = vmatprep.mubr.msk.f32.mxu0 %vm435_vm1, %v3841_v54 }
  0x3c   : > { %3138 = vmatmul.mubr.msk.f32.gmra.mrb[12].mxu1 %vm435_vm1, %v3851_v55 }
  0x3d   : > { %3140 = vmatprep.mubr.msk.f32.mxu1 %vm435_vm1, %v3857_v57 }
  0x3e   : > { %3256 = vmatmul.mubr.msk.f32.gmra.mrb[4].mxu0 %vm435_vm1, %v3855_v56 }
  0x3f   : > { %3258 = vmatprep.mubr.msk.f32.mxu0 %vm435_vm1, %v3859_v58 }
  0x40   : > { %3141 = vmatmul.mubr.msk.f32.gmra.mrb[14].mxu1 %vm435_vm1, %v3867_v59 }
  0x41   : > { %3145 = vmatprep.mubr.msk.f32.mxu1 %vm435_vm1, %v475_v61 }
  0x42   : > { %3259 = vmatmul.mubr.msk.f32.gmra.mrb[6].mxu0 %vm435_vm1, %v3871_v60 }
  0x43   : > { %3261 = vmatprep.mubr.msk.f32.mxu0 %vm435_vm1, %v3873_v62 }
  0x44   : > { %3146 = vmatmul.mubr.msk.f32.vlgmr.msra.gmra.mrb[0].mxu1 %vm435_vm1, %v476_v63 }
  0x45   : > { %3170 = vmatpush3.msk.msra.mxu1 %vm558_vm0, %v3756_v34  ;;  %3148 = vmatprep.mubr.msk.f32.mxu1 %vm435_vm1, %v3884_v2  ;;  %v2300_v34 = vld [vmem:[#allocation2 + $0xe2] sm:$0xff] }
  0x46   : > { %3262 = vmatmul.mubr.msk.f32.gmra.mrb[8].mxu0 %vm435_vm1, %v3882_v0  ;;  %3195 = vmatprep.subr.msk.mxu1 %vm558_vm0, %v2854_v4 }
  0x47   : > { %3264 = vmatprep.mubr.msk.f32.mxu0 %vm435_vm1, %v3886_v3 }
  0x48   : > { %3149 = vmatmul.mubr.msk.f32.gmra.mrb[2].mxu1 %vm435_vm1, %v3896_v5 }
  0x49   : > { %3151 = vmatprep.mubr.msk.f32.mxu1 %vm435_vm1, %v3904_v7 }
  0x4a   : > { %3265 = vmatmul.mubr.msk.f32.gmra.mrb[10].mxu0 %vm435_vm1, %v3902_v6 }
  0x4b   : > { %3267 = vmatprep.mubr.msk.f32.mxu0 %vm435_vm1, %v3906_v8 }
  0x4c   : > { %3152 = vmatmul.mubr.msk.f32.gmra.mrb[4].mxu1 %vm435_vm1, %v3915_v9 }
  0x4d   : > { %3154 = vmatprep.mubr.msk.f32.mxu1 %vm435_vm1, %v3921_v11 }
  0x4e   : > { %3268 = vmatmul.mubr.msk.f32.gmra.mrb[12].mxu0 %vm435_vm1, %v3919_v10 }
  0x4f   : > { %3270 = vmatprep.mubr.msk.f32.mxu0 %vm435_vm1, %v3923_v12 }
  0x50   : > { %3155 = vmatmul.mubr.msk.f32.gmra.mrb[6].mxu1 %vm435_vm1, %v3931_v13 }
  0x51   : > { %3157 = vmatprep.mubr.msk.f32.mxu1 %vm435_vm1, %v3937_v15 }
  0x52   : > { %3271 = vmatmul.mubr.msk.f32.gmra.mrb[14].mxu0 %vm435_vm1, %v3935_v14 }
  0x53   : > { %3275 = vmatprep.mubr.msk.f32.mxu0 %vm435_vm1, %v3904_v7 }
  0x54   : > { %3158 = vmatmul.mubr.msk.f32.gmra.mrb[8].mxu1 %vm435_vm1, %v3945_v16 }
  0x55   : > { %3160 = vmatprep.mubr.msk.f32.mxu1 %vm435_vm1, %v3949_v17 }
  0x56   : > { %3276 = vmatmul.mubr.msk.f32.vlgmr.msra.gmra.mrb[0].mxu0 %vm435_vm1, %v3915_v9 }
  0x57   : > { %3300 = vmatpush3.msk.msra.mxu0 %vm558_vm0, %v3823_v50  ;;  %3278 = vmatprep.mubr.msk.f32.mxu0 %vm435_vm1, %v3921_v11 }
  0x58   : > { %3325 = vmatprep.subr.msk.mxu0 %vm558_vm0, %v2944_v18  ;;  %3161 = vmatmul.mubr.msk.f32.gmra.mrb[10].mxu1 %vm435_vm1, %v3960_v19 }
  0x59   : > { %3163 = vmatprep.mubr.msk.f32.mxu1 %vm435_vm1, %v3966_v20 }
  0x5a   : > { %3279 = vmatmul.mubr.msk.f32.gmra.mrb[2].mxu0 %vm435_vm1, %v3931_v13 }
  0x5b   : > { %3281 = vmatprep.mubr.msk.f32.mxu0 %vm435_vm1, %v3937_v15 }
  0x5c   : > { %3164 = vmatmul.mubr.msk.f32.gmra.mrb[12].mxu1 %vm435_vm1, %v3975_v21 }
  0x5d   : > { %3166 = vmatprep.mubr.msk.f32.mxu1 %vm435_vm1, %v3979_v22 }
  0x5e   : > { %3282 = vmatmul.mubr.msk.f32.gmra.mrb[4].mxu0 %vm435_vm1, %v3945_v16 }
  0x5f   : > { %3284 = vmatprep.mubr.msk.f32.mxu0 %vm435_vm1, %v3949_v17 }
  0x60   : > { %3167 = vmatmul.mubr.msk.f32.gmra.mrb[14].mxu1 %vm435_vm1, %v3987_v23 }
  0x61   : > { %3171 = vmatprep.mubr.msk.f32.mxu1 %vm435_vm1, %v903_v24 }
  0x62   : > { %3285 = vmatmul.mubr.msk.f32.gmra.mrb[6].mxu0 %vm435_vm1, %v3960_v19 }
  0x63   : > { %3287 = vmatprep.mubr.msk.f32.mxu0 %vm435_vm1, %v3966_v20 }
  0x64   : > { %3172 = vmatmul.mubr.msk.f32.vlgmr.msra.gmra.mrb[0].mxu1 %vm435_vm1, %v904_v25 }
  0x65   : > { %3196 = vmatpush3.msk.msra.mxu1 %vm558_vm0, %v2854_v4  ;;  %3174 = vmatprep.mubr.msk.f32.mxu1 %vm435_vm1, %v3796_v42 }
  0x66   : > { %3288 = vmatmul.mubr.msk.f32.gmra.mrb[8].mxu0 %vm435_vm1, %v3975_v21  ;;  %3351 = vmatprep.subr.msk.mxu1 %vm558_vm0, %v3635_v1 }
  0x67   : > { %3290 = vmatprep.mubr.msk.f32.mxu0 %vm435_vm1, %v3979_v22 }
  0x68   : > { %3175 = vmatmul.mubr.msk.f32.gmra.mrb[2].mxu1 %vm435_vm1, %v3812_v44 }
  0x69   : > { %3177 = vmatprep.mubr.msk.f32.mxu1 %vm435_vm1, %v3816_v46 }
  0x6a   : > { %3291 = vmatmul.mubr.msk.f32.gmra.mrb[10].mxu0 %vm435_vm1, %v3987_v23 }
  0x6b   : > { %3293 = vmatprep.mubr.msk.f32.mxu0 %vm435_vm1, %v4006_v26 }
  0x6c   : > { %3178 = vmatmul.mubr.msk.f32.gmra.mrb[4].mxu1 %vm435_vm1, %v3837_v52 }
  0x6d   : > { %3180 = vmatprep.mubr.msk.f32.mxu1 %vm435_vm1, %v3841_v54 }
  0x6e   : > { %3294 = vmatmul.mubr.msk.f32.gmra.mrb[12].mxu0 %vm435_vm1, %v1838_v27 }
  0x6f   : > { %3296 = vmatprep.mubr.msk.f32.mxu0 %vm435_vm1, %v1839_v28 }
  0x70   : > { %3181 = vmatmul.mubr.msk.f32.gmra.mrb[6].mxu1 %vm435_vm1, %v3855_v56 }
  0x71   : > { %3183 = vmatprep.mubr.msk.f32.mxu1 %vm435_vm1, %v3859_v58 }
  0x72   : > { %3297 = vmatmul.mubr.msk.f32.gmra.mrb[14].mxu0 %vm435_vm1, %v1840_v29 }
  0x73   : > { %3301 = vmatprep.mubr.msk.f32.mxu0 %vm435_vm1, %v3745_v32  ;;  %v2070_v32 = vld [vmem:[#allocation2 + $0xe1] sm:$0xff] }
  0x74   : > { %3184 = vmatmul.mubr.msk.f32.gmra.mrb[8].mxu1 %vm435_vm1, %v3871_v60 }
  0x75   : > { %3186 = vmatprep.mubr.msk.f32.mxu1 %vm435_vm1, %v3873_v62 }
  0x76   : > { %3302 = vmatmul.mubr.msk.f32.vlgmr.msra.gmra.mrb[0].mxu0 %vm435_vm1, %v3762_v35  ;;  %v3566_v35 = vmov 0.0  }
  0x77   : > { %3326 = vmatpush3.msk.msra.mxu0 %vm558_vm0, %v2944_v18  ;;  %3304 = vmatprep.mubr.msk.f32.mxu0 %vm435_vm1, %v3766_v36  ;;  %2531 = vst [vmem:[%s4155_s15] sm:$0xff] %v3566_v35 }
  0x78   : > { %3187 = vmatmul.mubr.msk.f32.gmra.mrb[10].mxu1 %vm435_vm1, %v3882_v0 }
  0x79   : > { %3189 = vmatprep.mubr.msk.f32.mxu1 %vm435_vm1, %v3886_v3 }
  0x7a   : > { %3305 = vmatmul.mubr.msk.f32.gmra.mrb[2].mxu0 %vm435_vm1, %v3778_v37 }
  0x7b   : > { %3307 = vmatprep.mubr.msk.f32.mxu0 %vm435_vm1, %v3781_v38 }
  0x7c   : > { %3190 = vmatmul.mubr.msk.f32.gmra.mrb[12].mxu1 %vm435_vm1, %v3902_v6 }
  0x7d   : > { %3192 = vmatprep.mubr.msk.f32.mxu1 %vm435_vm1, %v3906_v8 }
  0x7e   : > { %3308 = vmatmul.mubr.msk.f32.gmra.mrb[4].mxu0 %vm435_vm1, %v3794_v39 }
  0x7f   : > { %3310 = vmatprep.mubr.msk.f32.mxu0 %vm435_vm1, %v3814_v45 }
  0x80   : > { %3193 = vmatmul.mubr.msk.f32.gmra.mrb[14].mxu1 %vm435_vm1, %v3919_v10 }
  0x81   : > { %3197 = vmatprep.mubr.msk.f32.mxu1 %vm435_vm1, %v3884_v2 }
  0x82   : > { %3311 = vmatmul.mubr.msk.f32.gmra.mrb[6].mxu0 %vm435_vm1, %v3832_v51 }
  0x83   : > { %3313 = vmatprep.mubr.msk.f32.mxu0 %vm435_vm1, %v3839_v53 }
  0x84   : > { %3198 = vmatmul.mubr.msk.f32.vlgmr.msra.gmra.mrb[0].mxu1 %vm435_vm1, %v3896_v5 }
  0x85   : > { %3352 = vmatpush3.msk.msra.mxu1 %vm558_vm0, %v3635_v1  ;;  %3200 = vmatprep.mubr.msk.f32.mxu1 %vm435_vm1, %v3904_v7  ;;  %v2068_v1 = vld [vmem:[#allocation2 + $0xc9] sm:$0xff] }
  0x86   : > { %3314 = vmatmul.mubr.msk.f32.gmra.mrb[8].mxu0 %vm435_vm1, %v3851_v55 }
  0x87   : > { %3316 = vmatprep.mubr.msk.f32.mxu0 %vm435_vm1, %v3857_v57 }
  0x88   : > { %3201 = vmatmul.mubr.msk.f32.gmra.mrb[2].mxu1 %vm435_vm1, %v3915_v9 }
  0x89   : > { %3203 = vmatprep.mubr.msk.f32.mxu1 %vm435_vm1, %v3921_v11 }
  0x8a   : > { %3317 = vmatmul.mubr.msk.f32.gmra.mrb[10].mxu0 %vm435_vm1, %v3867_v59 }
  0x8b   : > { %3319 = vmatprep.mubr.msk.f32.mxu0 %vm435_vm1, %v2067_v30 }
  0x8c   : > { %3204 = vmatmul.mubr.msk.f32.gmra.mrb[4].mxu1 %vm435_vm1, %v3931_v13 }
  0x8d   : > { %3206 = vmatprep.mubr.msk.f32.mxu1 %vm435_vm1, %v3937_v15 }
  0x8e   : > { %3320 = vmatmul.mubr.msk.f32.gmra.mrb[12].mxu0 %vm435_vm1, %v2068_v1 }
  0x8f   : > { %3322 = vmatprep.mubr.msk.f32.mxu0 %vm435_vm1, %v2069_v31 }
  0x90   : > { %3207 = vmatmul.mubr.msk.f32.gmra.mrb[6].mxu1 %vm435_vm1, %v3945_v16 }
  0x91   : > { %3209 = vmatprep.mubr.msk.f32.mxu1 %vm435_vm1, %v3949_v17 }
  0x92   : > { %3323 = vmatmul.mubr.msk.f32.gmra.mrb[14].mxu0 %vm435_vm1, %v2070_v32 }
  0x93   : > { %3327 = vmatprep.mubr.msk.f32.mxu0 %vm435_vm1, %v3816_v46 }
  0x94   : > { %3210 = vmatmul.mubr.msk.f32.gmra.mrb[8].mxu1 %vm435_vm1, %v3960_v19 }
  0x95   : > { %3212 = vmatprep.mubr.msk.f32.mxu1 %vm435_vm1, %v3966_v20 }
  0x96   : > { %3328 = vmatmul.mubr.msk.f32.vlgmr.msra.gmra.mrb[0].mxu0 %vm435_vm1, %v3837_v52 }
  0x97   : > { %3330 = vmatprep.mubr.msk.f32.mxu0 %vm435_vm1, %v3841_v54 }
  0x98   : > { %3213 = vmatmul.mubr.msk.f32.gmra.mrb[10].mxu1 %vm435_vm1, %v3975_v21 }
  0x99   : > { %3215 = vmatprep.mubr.msk.f32.mxu1 %vm435_vm1, %v3979_v22 }
  0x9a   : > { %3331 = vmatmul.mubr.msk.f32.gmra.mrb[2].mxu0 %vm435_vm1, %v3855_v56 }
  0x9b   : > { %3333 = vmatprep.mubr.msk.f32.mxu0 %vm435_vm1, %v3859_v58 }
  0x9c   : > { %3216 = vmatmul.mubr.msk.f32.gmra.mrb[12].mxu1 %vm435_vm1, %v3987_v23 }
  0x9d   : > { %3218 = vmatprep.mubr.msk.f32.mxu1 %vm435_vm1, %v4006_v26 }
  0x9e   : > { %3334 = vmatmul.mubr.msk.f32.gmra.mrb[4].mxu0 %vm435_vm1, %v3871_v60 }
  0x9f   : > { %3336 = vmatprep.mubr.msk.f32.mxu0 %vm435_vm1, %v3873_v62 }
  0xa0   : > { %3219 = vmatmul.mubr.msk.f32.gmra.mrb[14].mxu1 %vm435_vm1, %v1838_v27 }
  0xa1   : > { %3235 = vmatprep.mubr.msk.f32.mxu1 %vm435_vm1, %v3814_v45 }
  0xa2   : > { %3337 = vmatmul.mubr.msk.f32.gmra.mrb[6].mxu0 %vm435_vm1, %v3882_v0 }
  0xa3   : > { %3339 = vmatprep.mubr.msk.f32.mxu0 %vm435_vm1, %v3886_v3 }
  0xa4   : > { %3236 = vmatmul.mubr.msk.f32.vlgmr.msra.gmra.mrb[8].mxu1 %vm435_vm1, %v3832_v51 }
  0xa5   : > { %3238 = vmatprep.mubr.msk.f32.mxu1 %vm435_vm1, %v3839_v53 }
  0xa6   : > { %3340 = vmatmul.mubr.msk.f32.gmra.mrb[8].mxu0 %vm435_vm1, %v3902_v6 }
  0xa7   : > { %3342 = vmatprep.mubr.msk.f32.mxu0 %vm435_vm1, %v3906_v8 }
  0xa8   : > { %3239 = vmatmul.mubr.msk.f32.gmra.mrb[10].mxu1 %vm435_vm1, %v3851_v55 }
  0xa9   : > { %3241 = vmatprep.mubr.msk.f32.mxu1 %vm435_vm1, %v3857_v57 }
  0xaa   : > { %3343 = vmatmul.mubr.msk.f32.gmra.mrb[10].mxu0 %vm435_vm1, %v3919_v10 }
  0xab   : > { %3345 = vmatprep.mubr.msk.f32.mxu0 %vm435_vm1, %v3923_v12 }
  0xac   : > { %3242 = vmatmul.mubr.msk.f32.gmra.mrb[12].mxu1 %vm435_vm1, %v3867_v59 }
  0xad   : > { %3244 = vmatprep.mubr.msk.f32.mxu1 %vm435_vm1, %v2067_v30 }
  0xae   : > { %3346 = vmatmul.mubr.msk.f32.gmra.mrb[12].mxu0 %vm435_vm1, %v3935_v14 }
  0xaf   : > { %3348 = vmatprep.mubr.msk.f32.mxu0 %vm435_vm1, %v2299_v33 }
  0xb0   : > { %3245 = vmatmul.mubr.msk.f32.gmra.mrb[14].mxu1 %vm435_vm1, %v2068_v1 }
  0xb2   : > { %3349 = vmatmul.mubr.msk.f32.gmra.mrb[14].mxu0 %vm435_vm1, %v2300_v34 }
 0x157   : > { %v3199_v36 = vpop.f32.mrb[0].mxu1 }
 0x158   : > { %v1269_v37 = vpop.f32.mrb[1].mxu1 }
 0x15b   : > { %v3202_v38 = vpop.f32.mrb[2].mxu1 }
 0x15c   : > { %v1279_v39 = vpop.f32.mrb[3].mxu1 }
 0x15f   : > { %v3205_v40 = vpop.f32.mrb[4].mxu1 }
 0x160   : > { %v1289_v41 = vpop.f32.mrb[5].mxu1 }
 0x163   : > { %v3208_v42 = vpop.f32.mrb[6].mxu1 }
 0x164   : > { %v1299_v43 = vpop.f32.mrb[7].mxu1 }
 0x169   : > { %v3329_v44 = vpop.f32.mrb[0].mxu0 }
 0x16a   : > { %v3353_v45 = vadd.f32 %v3329_v44, %v3199_v36  ;;  %v2420_v46 = vpop.f32.mrb[1].mxu0 }
 0x16b   : > { %v3354_v47 = vadd.f32 %v2420_v46, %v1269_v37 }
 0x16c   : > { %2516 = vst [vmem:[%s4164_s27 + $0x8] sm:$0xff] %v3353_v45  ;;  %v2555_v48 = vmul.f32 %v3353_v45, %v3353_v45 }
 0x16d   : > { %2515 = vst [vmem:[%s4164_s27] sm:$0xff] %v3354_v47  ;;  %v2532_v49 = vadd.f32 %v3354_v47, %v3353_v45  ;;  %v2554_v50 = vmul.f32 %v3354_v47, %v3354_v47  ;;  %v3332_v51 = vpop.f32.mrb[2].mxu0 }
 0x16e   : > { %v3355_v52 = vadd.f32 %v3332_v51, %v3202_v38  ;;  %v2430_v53 = vpop.f32.mrb[3].mxu0 }
 0x16f   : > { %v2570_v54 = vadd.f32 %v2555_v48, %v2554_v50  ;;  %v3356_v55 = vadd.f32 %v2430_v53, %v1279_v39 }
 0x170   : > { %2518 = vst [vmem:[%s4164_s27 + $0x18] sm:$0xff] %v3355_v52  ;;  %v2557_v61 = vmul.f32 %v3355_v52, %v3355_v52 }
 0x171   : > { %2517 = vst [vmem:[%s4164_s27 + $0x10] sm:$0xff] %v3356_v55  ;;  %v2533_v56 = vadd.f32 %v3356_v55, %v2532_v49  ;;  %v2556_v57 = vmul.f32 %v3356_v55, %v3356_v55  ;;  %v3335_v58 = vpop.f32.mrb[4].mxu0 }
 0x172   : > { %v3357_v59 = vadd.f32 %v3335_v58, %v3205_v40  ;;  %v2440_v60 = vpop.f32.mrb[5].mxu0 }
 0x173   : > { %v2571_v62 = vadd.f32 %v2570_v54, %v2556_v57  ;;  %v3358_v63 = vadd.f32 %v2440_v60, %v1289_v41  ;;  %v2534_v0 = vadd.f32 %v3355_v52, %v2533_v56 }
 0x174   : > { %2520 = vst [vmem:[%s4164_s27 + $0x28] sm:$0xff] %v3357_v59  ;;  %v2559_v8 = vmul.f32 %v3357_v59, %v3357_v59 }
 0x175   : > { %2519 = vst [vmem:[%s4164_s27 + $0x20] sm:$0xff] %v3358_v63  ;;  %v2535_v2 = vadd.f32 %v3358_v63, %v2534_v0  ;;  %v2558_v3 = vmul.f32 %v3358_v63, %v3358_v63  ;;  %v2572_v4 = vadd.f32 %v2571_v62, %v2557_v61  ;;  %v3338_v5 = vpop.f32.mrb[6].mxu0 }
 0x176   : > { %v3359_v6 = vadd.f32 %v3338_v5, %v3208_v42  ;;  %v2450_v7 = vpop.f32.mrb[7].mxu0 }
 0x177   : > { %v2573_v9 = vadd.f32 %v2572_v4, %v2558_v3  ;;  %v3360_v10 = vadd.f32 %v2450_v7, %v1299_v43  ;;  %v2536_v11 = vadd.f32 %v3357_v59, %v2535_v2  ;;  %v3237_v12 = vpop.f32.mrb[8].mxu1 }
 0x178   : > { %2522 = vst [vmem:[%s4164_s27 + $0x38] sm:$0xff] %v3359_v6  ;;  %v1539_v17 = vpop.f32.mrb[9].mxu1  ;;  %v2561_v20 = vmul.f32 %v3359_v6, %v3359_v6 }
 0x179   : > { %2521 = vst [vmem:[%s4164_s27 + $0x30] sm:$0xff] %v3360_v10  ;;  %v2537_v13 = vadd.f32 %v3360_v10, %v2536_v11  ;;  %v2560_v14 = vmul.f32 %v3360_v10, %v3360_v10  ;;  %v2574_v15 = vadd.f32 %v2573_v9, %v2559_v8  ;;  %v3341_v16 = vpop.f32.mrb[8].mxu0 }
 0x17a   : > { %v3361_v18 = vadd.f32 %v3341_v16, %v3237_v12  ;;  %v2460_v19 = vpop.f32.mrb[9].mxu0 }
 0x17b   : > { %v2575_v21 = vadd.f32 %v2574_v15, %v2560_v14  ;;  %v3362_v22 = vadd.f32 %v2460_v19, %v1539_v17  ;;  %v2538_v23 = vadd.f32 %v3359_v6, %v2537_v13  ;;  %v3240_v24 = vpop.f32.mrb[10].mxu1 }
 0x17c   : > { %2524 = vst [vmem:[%s4164_s27 + $0x48] sm:$0xff] %v3361_v18  ;;  %v1549_v29 = vpop.f32.mrb[11].mxu1  ;;  %v2563_v31 = vmul.f32 %v3361_v18, %v3361_v18 }
 0x17d   : > { %2523 = vst [vmem:[%s4164_s27 + $0x40] sm:$0xff] %v3362_v22  ;;  %v2539_v25 = vadd.f32 %v3362_v22, %v2538_v23  ;;  %v2562_v26 = vmul.f32 %v3362_v22, %v3362_v22  ;;  %v2576_v27 = vadd.f32 %v2575_v21, %v2561_v20  ;;  %v3344_v28 = vpop.f32.mrb[10].mxu0 }
 0x17e   : > { %v3363_v30 = vadd.f32 %v3344_v28, %v3240_v24  ;;  %v2470_v1 = vpop.f32.mrb[11].mxu0 }
 0x17f   : > { %v2577_v32 = vadd.f32 %v2576_v27, %v2562_v26  ;;  %v3364_v33 = vadd.f32 %v2470_v1, %v1549_v29  ;;  %v2540_v34 = vadd.f32 %v3361_v18, %v2539_v25  ;;  %v3243_v35 = vpop.f32.mrb[12].mxu1 }
 0x180   : > { %2526 = vst [vmem:[%s4164_s27 + $0x58] sm:$0xff] %v3363_v30  ;;  %v1559_v40 = vpop.f32.mrb[13].mxu1  ;;  %v2565_v43 = vmul.f32 %v3363_v30, %v3363_v30 }
 0x181   : > { %2525 = vst [vmem:[%s4164_s27 + $0x50] sm:$0xff] %v3364_v33  ;;  %v2541_v36 = vadd.f32 %v3364_v33, %v2540_v34  ;;  %v2564_v37 = vmul.f32 %v3364_v33, %v3364_v33  ;;  %v2578_v38 = vadd.f32 %v2577_v32, %v2563_v31  ;;  %v3347_v39 = vpop.f32.mrb[12].mxu0 }
 0x182   : > { %v3365_v41 = vadd.f32 %v3347_v39, %v3243_v35  ;;  %v2480_v42 = vpop.f32.mrb[13].mxu0 }
 0x183   : > { %v2579_v44 = vadd.f32 %v2578_v38, %v2564_v37  ;;  %v3366_v45 = vadd.f32 %v2480_v42, %v1559_v40  ;;  %v2542_v46 = vadd.f32 %v3363_v30, %v2541_v36  ;;  %v3246_v47 = vpop.f32.mrb[14].mxu1 }
 0x184   : > { %2528 = vst [vmem:[%s4164_s27 + $0x68] sm:$0xff] %v3365_v41  ;;  %v1569_v52 = vpop.f32.mrb[15].mxu1  ;;  %v2567_v55 = vmul.f32 %v3365_v41, %v3365_v41 }
 0x185   : > { %2527 = vst [vmem:[%s4164_s27 + $0x60] sm:$0xff] %v3366_v45  ;;  %v2543_v48 = vadd.f32 %v3366_v45, %v2542_v46  ;;  %v2566_v49 = vmul.f32 %v3366_v45, %v3366_v45  ;;  %v2580_v50 = vadd.f32 %v2579_v44, %v2565_v43  ;;  %v3350_v51 = vpop.f32.mrb[14].mxu0 }
 0x186   : > { %v3367_v53 = vadd.f32 %v3350_v51, %v3246_v47  ;;  %v2490_v54 = vpop.f32.mrb[15].mxu0 }
 0x187   : > { %v2581_v56 = vadd.f32 %v2580_v50, %v2566_v49  ;;  %v3368_v57 = vadd.f32 %v2490_v54, %v1569_v52  ;;  %v2544_v58 = vadd.f32 %v3365_v41, %v2543_v48 }
 0x188   : > { %2530 = vst [vmem:[%s4164_s27 + $0x78] sm:$0xff] %v3367_v53  ;;  %v2569_v62 = vmul.f32 %v3367_v53, %v3367_v53 }
 0x189   : > { %2529 = vst [vmem:[%s4164_s27 + $0x70] sm:$0xff] %v3368_v57  ;;  %v2545_v59 = vadd.f32 %v3368_v57, %v2544_v58  ;;  %v2568_v60 = vmul.f32 %v3368_v57, %v3368_v57  ;;  %v2582_v61 = vadd.f32 %v2581_v56, %v2567_v55 }
 0x18b   : > { %v2546_v63 = vadd.f32 %v3367_v53, %v2545_v59  ;;  %v2583_v0 = vadd.f32 %v2582_v61, %v2568_v60 }
 0x18d   : > { %v2547_v2 = vrot.slane %v2546_v63, 4  ;;  %v2584_v3 = vadd.f32 %v2583_v0, %v2569_v62 }
 0x18f   : > { %v2548_v4 = vadd.f32 %v2547_v2, %v2546_v63  ;;  %v2585_v5 = vrot.slane %v2584_v3, 4 }
 0x191   : > { %v2549_v6 = vrot.slane %v2548_v4, 2  ;;  %v2586_v7 = vadd.f32 %v2585_v5, %v2584_v3 }
 0x193   : > { %v2550_v8 = vadd.f32 %v2549_v6, %v2548_v4  ;;  %v2587_v9 = vrot.slane %v2586_v7, 2 }
 0x195   : > { %v2551_v10 = vrot.slane %v2550_v8, 1  ;;  %v2588_v11 = vadd.f32 %v2587_v9, %v2586_v7 }
 0x197   : > { %v2552_v12 = vadd.f32 %v2551_v10, %v2550_v8  ;;  %v2589_v13 = vrot.slane %v2588_v11, 1 }
 0x199   : > { %2553 = vst [vmem:[%s4155_s15] sm:$0x1] %v2552_v12  ;;  %v2590_v14 = vadd.f32 %v2589_v13, %v2588_v11 }
 0x19b   : > { %2591 = vst [vmem:[%s4155_s15 + $0x1] sm:$0x1] %v2590_v14 }
 0x19c PF: > { %s16_s22 = sadd.s32 1, %s3564_s22   ;;  %s4207_s18 = smov %s3556_s20 }
 0x19d   : > { %p13_p11 = scmp.ge.s32.totalorder %s16_s22, 6   ;;  %s4208_s19 = smov %s3560_s21 }
 0x19e   : > { %s4209_s20 = smov %s4212_s23  ;;  %s4210_s21 = smov %s4216_s24 }
 0x19f   :  { %15 = sbr.rel (!%p13_p11) target bundleno = 3 (0x3), region = 96 }

</bundles_post_ra>
